<compile_context>
chip_gen: v6e
topology: v6e:2x2x1
jax: 0.10.0
libtpu: 0.0.40
codegen_flags: <defaults>
</compile_context>

<pallas_src>
import functools
import math

import jax
import jax.numpy as jnp
from jax.experimental import pallas as pl
from jax.experimental.pallas import tpu as pltpu


def _round_up(x, m):
    return ((x + m - 1) // m) * m


# ----------------------------- fused kernel ----------------------------------


def postnet_kernel(x_ref, w_ref, b_ref, scale_ref, shift_ref, o_ref, *,
                   seq_len, time_tile, nconv, ksize, pad):
    """Fused PostNet forward for one (batch, time-tile) grid step.

    x_ref:     (T_in, C)         zero-padded full sequence of this batch element
                                  (resident in VMEM across all time tiles).
    w_ref:     (nconv, k, C, C)  per-layer, per-tap (C_in, C_out) weights.
    b_ref:     (nconv, 1, C)     conv biases.
    scale_ref: (nconv, 1, C)     BN gamma / sqrt(running_var + eps).
    shift_ref: (nconv, 1, C)     BN beta - running_mean * scale.
    o_ref:     (time_tile, C)    output tile of the last layer.
    """
    t = pl.program_id(1)
    halo = nconv * pad
    win0 = time_tile + 2 * halo
    # time_tile is a multiple of 8, so the dynamic sublane offset is aligned.
    start = pl.multiple_of(t * time_tile, 8)
    # Position (in original, un-padded time coords) of local row 0 of the window.
    base0 = t * time_tile - halo

    cur = x_ref[pl.ds(start, win0), :]
    for l in range(nconv):                               # static unroll over layers
        win_out = win0 - 2 * (l + 1) * pad
        # Conv1d as k shifted 2-D matmuls on the MXU (batch already squeezed by grid).
        # Tap slices are small static sublane shifts (k <= 5); pltpu.roll/im2col are
        # possible further micro-opts on the idle XLU.
        acc = jnp.dot(cur[0:win_out, :], w_ref[l, 0],
                      preferred_element_type=jnp.float32)
        for j in range(1, ksize):                        # static unroll over taps
            acc = acc + jnp.dot(cur[j:j + win_out, :], w_ref[l, j],
                                preferred_element_type=jnp.float32)
        y = acc + b_ref[l]
        # bn_before_act=False: activation first (Tanh for all but the last layer,
        # Identity for the last), then BatchNorm (eval, folded to scale/shift).
        if l < nconv - 1:
            y = jnp.tanh(y)
        y = y * scale_ref[l] + shift_ref[l]
        # Dropout: identity in eval mode.
        if l < nconv - 1:
            # Halo rows outside the real sequence [0, seq_len) must be zero before they
            # feed the next layer (they stand in for that layer's zero conv padding).
            pos = base0 + (l + 1) * pad + jax.lax.broadcasted_iota(
                jnp.int32, (win_out, 1), 0)
            y = jnp.where((pos >= 0) & (pos < seq_len), y, 0.0)
        cur = y

    o_ref[...] = cur.astype(o_ref.dtype)                 # cur is exactly (time_tile, C)


# ----------------------------- wrapper ----------------------------------------


def postnet_forward(params, x, *, conv_kernel, mask=None, time_tile=256):
    """x: (B, T, hidden) -> (B, T, conv_filters). Eval-mode PostNet forward."""
    assert conv_kernel % 2 == 1, "'same' padding in the reference module needs odd k"
    if mask is not None:
        # TODO(synk): optional per-layer masked_fill (mask==True -> 0.0) not fused yet.
        raise NotImplementedError("mask is not supported by the fused kernel")

    B, T, H_in = x.shape
    w, b, scale, shift = params["w"], params["b"], params["scale"], params["shift"]
    nconv, ksize, C = w.shape[0], w.shape[1], w.shape[2]
    assert ksize == conv_kernel
    pad = (conv_kernel - 1) // 2
    halo = nconv * pad

    tt = max(8, min(_round_up(time_tile, 8), _round_up(T, 8)))
    n_t = pl.cdiv(T, tt)
    t_round = n_t * tt
    t_in = t_round + 2 * halo

    # Single zero-pad of the input (shared halo for all fused layers, time rounded up to
    # the tile size, channels padded to a lane-dense multiple of 128).
    xp = jnp.pad(x, ((0, 0), (halo, t_round - T + halo), (0, C - H_in)))

    kernel = functools.partial(postnet_kernel, seq_len=T, time_tile=tt,
                               nconv=nconv, ksize=ksize, pad=pad)

    itemsize = x.dtype.itemsize
    est = (2 * t_in * C * itemsize                        # resident input (+ headroom)
           + 2 * nconv * ksize * C * C * w.dtype.itemsize  # weight stack
           + 6 * nconv * C * 4                             # bias / scale / shift
           + 2 * tt * C * itemsize                         # double-buffered output tile
           + 8 * (tt + 2 * halo) * C * 4)                  # live intermediates
    vmem_limit = int(min(max(2 * est, 32 * 1024 * 1024), 64 * 1024 * 1024))

    out = pl.pallas_call(
        kernel,
        out_shape=jax.ShapeDtypeStruct((B, t_round, C), x.dtype),
        grid=(B, n_t),
        in_specs=[
            pl.BlockSpec((None, t_in, C), lambda bi, ti: (bi, 0, 0)),
            pl.BlockSpec((nconv, ksize, C, C), lambda bi, ti: (0, 0, 0, 0)),
            pl.BlockSpec((nconv, 1, C), lambda bi, ti: (0, 0, 0)),
            pl.BlockSpec((nconv, 1, C), lambda bi, ti: (0, 0, 0)),
            pl.BlockSpec((nconv, 1, C), lambda bi, ti: (0, 0, 0)),
        ],
        out_specs=pl.BlockSpec((None, tt, C), lambda bi, ti: (bi, ti, 0)),
        compiler_params=pltpu.CompilerParams(
            dimension_semantics=("parallel", "parallel"),
            vmem_limit_bytes=vmem_limit),
    )(xp, w, b, scale, shift)

    return out[:, :T, :params["out_channels"]]


# ----------------------------- parameter init ---------------------------------


def glorot_uniform(key, shape, fan_in, fan_out, dtype=jnp.float32):
    limit = math.sqrt(6.0 / (fan_in + fan_out))
    return jax.random.uniform(key, shape, dtype, minval=-limit, maxval=limit)


def init_postnet(key, n_conv, hidden, conv_filters, conv_kernel):
    """Mirrors PostNet.__init__: ConvNorm uses xavier_uniform_ weights, zero biases;
    BatchNorm1d defaults gamma=1, beta=0, running_mean=0, running_var=1."""
    layers = []
    keys = jax.random.split(key, n_conv)
    for i in range(n_conv):
        in_ch = hidden if i == 0 else conv_filters
        out_ch = conv_filters
        w = glorot_uniform(keys[i], (out_ch, in_ch, conv_kernel),   # torch (O, I, k)
                           fan_in=in_ch * conv_kernel, fan_out=out_ch * conv_kernel)
        layers.append(dict(
            w=w,
            b=jnp.zeros((out_ch,), jnp.float32),
            gamma=jnp.ones((out_ch,), jnp.float32),
            beta=jnp.zeros((out_ch,), jnp.float32),
            mean=jnp.zeros((out_ch,), jnp.float32),
            var=jnp.ones((out_ch,), jnp.float32),
        ))
    return layers


def pack_postnet_params(layers, hidden, conv_filters, conv_kernel, eps=1e-5):
    """Pad channels to a lane-dense multiple of 128, fold BN (eval) into per-channel
    scale/shift, and stack layers so the fused kernel sees single arrays.  Padded
    channels get zero weights/bias, scale=1, shift=0 and stay exactly zero.

    Note: because the module applies BN AFTER the activation, folding the BN scale into
    the conv weights is only exact for the Identity (last) layer; the uniform per-channel
    affine in-kernel is negligible (VPU), so it is kept explicit for all layers."""
    nconv = len(layers)
    C = _round_up(max(hidden, conv_filters), 128)
    w = jnp.zeros((nconv, conv_kernel, C, C), jnp.float32)
    b = jnp.zeros((nconv, 1, C), jnp.float32)
    scale = jnp.ones((nconv, 1, C), jnp.float32)
    shift = jnp.zeros((nconv, 1, C), jnp.float32)
    for i, L in enumerate(layers):
        in_ch = hidden if i == 0 else conv_filters
        out_ch = conv_filters
        w_taps = jnp.transpose(L["w"], (2, 1, 0))            # (k, in, out)
        w = w.at[i, :, :in_ch, :out_ch].set(w_taps)
        b = b.at[i, 0, :out_ch].set(L["b"])
        s = L["gamma"] / jnp.sqrt(L["var"] + eps)
        scale = scale.at[i, 0, :out_ch].set(s)
        shift = shift.at[i, 0, :out_ch].set(L["beta"] - L["mean"] * s)
    return dict(w=w, b=b, scale=scale, shift=shift, out_channels=conv_filters)


# ----------------------------- pure-JAX reference ------------------------------


def postnet_reference(layers, x, conv_kernel, eps=1e-5):
    pad = (conv_kernel - 1) // 2
    y = jnp.transpose(x, (0, 2, 1))                          # (B, C, T), like the module
    for i, L in enumerate(layers):
        y = jax.lax.conv_general_dilated(
            y, L["w"], window_strides=(1,), padding=[(pad, pad)],
            dimension_numbers=("NCH", "OIH", "NCH"),
            precision=jax.lax.Precision.HIGHEST)
        y = y + L["b"][None, :, None]
        if i < len(layers) - 1:
            y = jnp.tanh(y)
        s = L["gamma"] / jnp.sqrt(L["var"] + eps)
        y = y * s[None, :, None] + (L["beta"] - L["mean"] * s)[None, :, None]
    return jnp.transpose(y, (0, 2, 1))


# ----------------------------- demo --------------------------------------------

if __name__ == "__main__":
    B, T, hidden = 2, 32, 32
    n_conv, conv_filters, conv_kernel = 3, 32, 5
    drop_rate = 0.5   # unused in eval (Dropout == identity)

    key = jax.random.PRNGKey(0)
    k_param, k_x = jax.random.split(key)
    layers = init_postnet(k_param, n_conv, hidden, conv_filters, conv_kernel)
    params = pack_postnet_params(layers, hidden, conv_filters, conv_kernel)
    x = jax.random.normal(k_x, (B, T, hidden), jnp.float32)

    # time_tile=16 forces a multi-tile time grid so the halo path is exercised.
    out = postnet_forward(params, x, conv_kernel=conv_kernel, time_tile=16)
    out = jax.block_until_ready(out)

    assert out.shape == (B, T, conv_filters), out.shape
    assert bool(jnp.all(jnp.isfinite(out)))

    ref = postnet_reference(layers, x, conv_kernel)
    max_err = float(jnp.max(jnp.abs(out - ref)))
    assert bool(jnp.allclose(out, ref, atol=5e-2, rtol=5e-2)), max_err

    print("KERNEL_OK")
</pallas_src>

<mosaic_0001>
module attributes {stable_mosaic.version = 11 : i64} {
  func.func @postnet_kernel(%arg0: i32, %arg1: i32, %arg2: memref<1x44x128xf32, #tpu.memory_space<vmem>>, %arg3: memref<3x5x128x128xf32, #tpu.memory_space<vmem>>, %arg4: memref<3x1x128xf32, #tpu.memory_space<vmem>>, %arg5: memref<3x1x128xf32, #tpu.memory_space<vmem>>, %arg6: memref<3x1x128xf32, #tpu.memory_space<vmem>>, %arg7: memref<1x16x128xf32, #tpu.memory_space<vmem>>) attributes {dimension_semantics = [#tpu.dimension_semantics<parallel>, #tpu.dimension_semantics<parallel>], iteration_bounds = array<i64: 2, 2>, scalar_prefetch = 0 : i64, scratch_operands = 0 : i64, tpu.core_type = #tpu.core_type<tc>, window_params = [{transform_indices = @transform_0, window_bounds = array<i64: 1, 44, 128>}, {pipeline_mode = #tpu.pipeline_mode<synchronous>, transform_indices = @transform_1, window_bounds = array<i64: 3, 5, 128, 128>}, {pipeline_mode = #tpu.pipeline_mode<synchronous>, transform_indices = @transform_2, window_bounds = array<i64: 3, 1, 128>}, {pipeline_mode = #tpu.pipeline_mode<synchronous>, transform_indices = @transform_3, window_bounds = array<i64: 3, 1, 128>}, {pipeline_mode = #tpu.pipeline_mode<synchronous>, transform_indices = @transform_4, window_bounds = array<i64: 3, 1, 128>}, {transform_indices = @transform_5, window_bounds = array<i64: 1, 16, 128>}]} {
    %c16_i32 = arith.constant 16 : i32
    %0 = arith.muli %arg1, %c16_i32 : i32
    %1 = tpu.assume_multiple %0, 8 : i32
    %c16_i32_0 = arith.constant 16 : i32
    %2 = arith.muli %arg1, %c16_i32_0 : i32
    %c6_i32 = arith.constant 6 : i32
    %3 = arith.subi %2, %c6_i32 : i32
    %c0 = arith.constant 0 : index
    %4 = arith.index_cast %1 : i32 to index
    %c0_1 = arith.constant 0 : index
    %5 = vector.load %arg2[%c0, %4, %c0_1] : memref<1x44x128xf32, #tpu.memory_space<vmem>>, vector<1x28x128xf32>
    %6 = vector.shape_cast %5 : vector<1x28x128xf32> to vector<28x128xf32>
    %7 = vector.extract_strided_slice %6 {offsets = [0, 0], sizes = [24, 128], strides = [1, 1]} : vector<28x128xf32> to vector<24x128xf32>
    %c0_2 = arith.constant 0 : index
    %c0_3 = arith.constant 0 : index
    %c0_4 = arith.constant 0 : index
    %c0_5 = arith.constant 0 : index
    %8 = vector.load %arg3[%c0_2, %c0_3, %c0_4, %c0_5] : memref<3x5x128x128xf32, #tpu.memory_space<vmem>>, vector<1x1x128x128xf32>
    %9 = vector.shape_cast %8 : vector<1x1x128x128xf32> to vector<128x128xf32>
    %cst = arith.constant dense<0.000000e+00> : vector<24x128xf32>
    %10 = tpu.matmul %7, %9, %cst {dimension_numbers = #tpu.dot_dimension_numbers<[1], [0], [0], [1], [0, 0, 1, 1], [], []>} : vector<24x128xf32>, vector<128x128xf32>, vector<24x128xf32> -> vector<24x128xf32>
    %11 = vector.extract_strided_slice %6 {offsets = [1, 0], sizes = [24, 128], strides = [1, 1]} : vector<28x128xf32> to vector<24x128xf32>
    %c0_6 = arith.constant 0 : index
    %c1 = arith.constant 1 : index
    %c0_7 = arith.constant 0 : index
    %c0_8 = arith.constant 0 : index
    %12 = vector.load %arg3[%c0_6, %c1, %c0_7, %c0_8] : memref<3x5x128x128xf32, #tpu.memory_space<vmem>>, vector<1x1x128x128xf32>
    %13 = vector.shape_cast %12 : vector<1x1x128x128xf32> to vector<128x128xf32>
    %cst_9 = arith.constant dense<0.000000e+00> : vector<24x128xf32>
    %14 = tpu.matmul %11, %13, %cst_9 {dimension_numbers = #tpu.dot_dimension_numbers<[1], [0], [0], [1], [0, 0, 1, 1], [], []>} : vector<24x128xf32>, vector<128x128xf32>, vector<24x128xf32> -> vector<24x128xf32>
    %15 = arith.addf %10, %14 : vector<24x128xf32>
    %16 = vector.extract_strided_slice %6 {offsets = [2, 0], sizes = [24, 128], strides = [1, 1]} : vector<28x128xf32> to vector<24x128xf32>
    %c0_10 = arith.constant 0 : index
    %c2 = arith.constant 2 : index
    %c0_11 = arith.constant 0 : index
    %c0_12 = arith.constant 0 : index
    %17 = vector.load %arg3[%c0_10, %c2, %c0_11, %c0_12] : memref<3x5x128x128xf32, #tpu.memory_space<vmem>>, vector<1x1x128x128xf32>
    %18 = vector.shape_cast %17 : vector<1x1x128x128xf32> to vector<128x128xf32>
    %cst_13 = arith.constant dense<0.000000e+00> : vector<24x128xf32>
    %19 = tpu.matmul %16, %18, %cst_13 {dimension_numbers = #tpu.dot_dimension_numbers<[1], [0], [0], [1], [0, 0, 1, 1], [], []>} : vector<24x128xf32>, vector<128x128xf32>, vector<24x128xf32> -> vector<24x128xf32>
    %20 = arith.addf %15, %19 : vector<24x128xf32>
    %21 = vector.extract_strided_slice %6 {offsets = [3, 0], sizes = [24, 128], strides = [1, 1]} : vector<28x128xf32> to vector<24x128xf32>
    %c0_14 = arith.constant 0 : index
    %c3 = arith.constant 3 : index
    %c0_15 = arith.constant 0 : index
    %c0_16 = arith.constant 0 : index
    %22 = vector.load %arg3[%c0_14, %c3, %c0_15, %c0_16] : memref<3x5x128x128xf32, #tpu.memory_space<vmem>>, vector<1x1x128x128xf32>
    %23 = vector.shape_cast %22 : vector<1x1x128x128xf32> to vector<128x128xf32>
    %cst_17 = arith.constant dense<0.000000e+00> : vector<24x128xf32>
    %24 = tpu.matmul %21, %23, %cst_17 {dimension_numbers = #tpu.dot_dimension_numbers<[1], [0], [0], [1], [0, 0, 1, 1], [], []>} : vector<24x128xf32>, vector<128x128xf32>, vector<24x128xf32> -> vector<24x128xf32>
    %25 = arith.addf %20, %24 : vector<24x128xf32>
    %26 = vector.extract_strided_slice %6 {offsets = [4, 0], sizes = [24, 128], strides = [1, 1]} : vector<28x128xf32> to vector<24x128xf32>
    %c0_18 = arith.constant 0 : index
    %c4 = arith.constant 4 : index
    %c0_19 = arith.constant 0 : index
    %c0_20 = arith.constant 0 : index
    %27 = vector.load %arg3[%c0_18, %c4, %c0_19, %c0_20] : memref<3x5x128x128xf32, #tpu.memory_space<vmem>>, vector<1x1x128x128xf32>
    %28 = vector.shape_cast %27 : vector<1x1x128x128xf32> to vector<128x128xf32>
    %cst_21 = arith.constant dense<0.000000e+00> : vector<24x128xf32>
    %29 = tpu.matmul %26, %28, %cst_21 {dimension_numbers = #tpu.dot_dimension_numbers<[1], [0], [0], [1], [0, 0, 1, 1], [], []>} : vector<24x128xf32>, vector<128x128xf32>, vector<24x128xf32> -> vector<24x128xf32>
    %30 = arith.addf %25, %29 : vector<24x128xf32>
    %c0_22 = arith.constant 0 : index
    %c0_23 = arith.constant 0 : index
    %c0_24 = arith.constant 0 : index
    %31 = vector.load %arg4[%c0_22, %c0_23, %c0_24] : memref<3x1x128xf32, #tpu.memory_space<vmem>>, vector<1x1x128xf32>
    %32 = vector.shape_cast %31 : vector<1x1x128xf32> to vector<1x128xf32>
    %33 = vector.broadcast %32 : vector<1x128xf32> to vector<24x128xf32>
    %34 = arith.addf %30, %33 : vector<24x128xf32>
    %35 = math.tanh %34 : vector<24x128xf32>
    %c0_25 = arith.constant 0 : index
    %c0_26 = arith.constant 0 : index
    %c0_27 = arith.constant 0 : index
    %36 = vector.load %arg5[%c0_25, %c0_26, %c0_27] : memref<3x1x128xf32, #tpu.memory_space<vmem>>, vector<1x1x128xf32>
    %37 = vector.shape_cast %36 : vector<1x1x128xf32> to vector<1x128xf32>
    %38 = vector.broadcast %37 : vector<1x128xf32> to vector<24x128xf32>
    %39 = arith.mulf %35, %38 : vector<24x128xf32>
    %c0_28 = arith.constant 0 : index
    %c0_29 = arith.constant 0 : index
    %c0_30 = arith.constant 0 : index
    %40 = vector.load %arg6[%c0_28, %c0_29, %c0_30] : memref<3x1x128xf32, #tpu.memory_space<vmem>>, vector<1x1x128xf32>
    %41 = vector.shape_cast %40 : vector<1x1x128xf32> to vector<1x128xf32>
    %42 = vector.broadcast %41 : vector<1x128xf32> to vector<24x128xf32>
    %43 = arith.addf %39, %42 : vector<24x128xf32>
    %c2_i32 = arith.constant 2 : i32
    %44 = arith.addi %3, %c2_i32 : i32
    %45 = tpu.iota {dimensions = array<i32: 0>} : vector<24x1xi32>
    %46 = vector.broadcast %44 : i32 to vector<24x1xi32>
    %47 = arith.addi %46, %45 : vector<24x1xi32>
    %c0_i32 = arith.constant 0 : i32
    %48 = vector.broadcast %c0_i32 : i32 to vector<24x1xi32>
    %49 = arith.cmpi sge, %47, %48 : vector<24x1xi32>
    %c32_i32 = arith.constant 32 : i32
    %50 = vector.broadcast %c32_i32 : i32 to vector<24x1xi32>
    %51 = arith.cmpi slt, %47, %50 : vector<24x1xi32>
    %52 = arith.andi %49, %51 : vector<24x1xi1>
    %cst_31 = arith.constant 0.000000e+00 : f32
    %53 = vector.shape_cast %52 : vector<24x1xi1> to vector<24x1xi1>
    %54 = vector.broadcast %53 : vector<24x1xi1> to vector<24x128xi1>
    %55 = vector.broadcast %cst_31 : f32 to vector<24x128xf32>
    %56 = arith.select %54, %43, %55 : vector<24x128xi1>, vector<24x128xf32>
    %57 = vector.extract_strided_slice %56 {offsets = [0, 0], sizes = [20, 128], strides = [1, 1]} : vector<24x128xf32> to vector<20x128xf32>
    %c1_32 = arith.constant 1 : index
    %c0_33 = arith.constant 0 : index
    %c0_34 = arith.constant 0 : index
    %c0_35 = arith.constant 0 : index
    %58 = vector.load %arg3[%c1_32, %c0_33, %c0_34, %c0_35] : memref<3x5x128x128xf32, #tpu.memory_space<vmem>>, vector<1x1x128x128xf32>
    %59 = vector.shape_cast %58 : vector<1x1x128x128xf32> to vector<128x128xf32>
    %cst_36 = arith.constant dense<0.000000e+00> : vector<20x128xf32>
    %60 = tpu.matmul %57, %59, %cst_36 {dimension_numbers = #tpu.dot_dimension_numbers<[1], [0], [0], [1], [0, 0, 1, 1], [], []>} : vector<20x128xf32>, vector<128x128xf32>, vector<20x128xf32> -> vector<20x128xf32>
    %61 = vector.extract_strided_slice %56 {offsets = [1, 0], sizes = [20, 128], strides = [1, 1]} : vector<24x128xf32> to vector<20x128xf32>
    %c1_37 = arith.constant 1 : index
    %c1_38 = arith.constant 1 : index
    %c0_39 = arith.constant 0 : index
    %c0_40 = arith.constant 0 : index
    %62 = vector.load %arg3[%c1_37, %c1_38, %c0_39, %c0_40] : memref<3x5x128x128xf32, #tpu.memory_space<vmem>>, vector<1x1x128x128xf32>
    %63 = vector.shape_cast %62 : vector<1x1x128x128xf32> to vector<128x128xf32>
    %cst_41 = arith.constant dense<0.000000e+00> : vector<20x128xf32>
    %64 = tpu.matmul %61, %63, %cst_41 {dimension_numbers = #tpu.dot_dimension_numbers<[1], [0], [0], [1], [0, 0, 1, 1], [], []>} : vector<20x128xf32>, vector<128x128xf32>, vector<20x128xf32> -> vector<20x128xf32>
    %65 = arith.addf %60, %64 : vector<20x128xf32>
    %66 = vector.extract_strided_slice %56 {offsets = [2, 0], sizes = [20, 128], strides = [1, 1]} : vector<24x128xf32> to vector<20x128xf32>
    %c1_42 = arith.constant 1 : index
    %c2_43 = arith.constant 2 : index
    %c0_44 = arith.constant 0 : index
    %c0_45 = arith.constant 0 : index
    %67 = vector.load %arg3[%c1_42, %c2_43, %c0_44, %c0_45] : memref<3x5x128x128xf32, #tpu.memory_space<vmem>>, vector<1x1x128x128xf32>
    %68 = vector.shape_cast %67 : vector<1x1x128x128xf32> to vector<128x128xf32>
    %cst_46 = arith.constant dense<0.000000e+00> : vector<20x128xf32>
    %69 = tpu.matmul %66, %68, %cst_46 {dimension_numbers = #tpu.dot_dimension_numbers<[1], [0], [0], [1], [0, 0, 1, 1], [], []>} : vector<20x128xf32>, vector<128x128xf32>, vector<20x128xf32> -> vector<20x128xf32>
    %70 = arith.addf %65, %69 : vector<20x128xf32>
    %71 = vector.extract_strided_slice %56 {offsets = [3, 0], sizes = [20, 128], strides = [1, 1]} : vector<24x128xf32> to vector<20x128xf32>
    %c1_47 = arith.constant 1 : index
    %c3_48 = arith.constant 3 : index
    %c0_49 = arith.constant 0 : index
    %c0_50 = arith.constant 0 : index
    %72 = vector.load %arg3[%c1_47, %c3_48, %c0_49, %c0_50] : memref<3x5x128x128xf32, #tpu.memory_space<vmem>>, vector<1x1x128x128xf32>
    %73 = vector.shape_cast %72 : vector<1x1x128x128xf32> to vector<128x128xf32>
    %cst_51 = arith.constant dense<0.000000e+00> : vector<20x128xf32>
    %74 = tpu.matmul %71, %73, %cst_51 {dimension_numbers = #tpu.dot_dimension_numbers<[1], [0], [0], [1], [0, 0, 1, 1], [], []>} : vector<20x128xf32>, vector<128x128xf32>, vector<20x128xf32> -> vector<20x128xf32>
    %75 = arith.addf %70, %74 : vector<20x128xf32>
    %76 = vector.extract_strided_slice %56 {offsets = [4, 0], sizes = [20, 128], strides = [1, 1]} : vector<24x128xf32> to vector<20x128xf32>
    %c1_52 = arith.constant 1 : index
    %c4_53 = arith.constant 4 : index
    %c0_54 = arith.constant 0 : index
    %c0_55 = arith.constant 0 : index
    %77 = vector.load %arg3[%c1_52, %c4_53, %c0_54, %c0_55] : memref<3x5x128x128xf32, #tpu.memory_space<vmem>>, vector<1x1x128x128xf32>
    %78 = vector.shape_cast %77 : vector<1x1x128x128xf32> to vector<128x128xf32>
    %cst_56 = arith.constant dense<0.000000e+00> : vector<20x128xf32>
    %79 = tpu.matmul %76, %78, %cst_56 {dimension_numbers = #tpu.dot_dimension_numbers<[1], [0], [0], [1], [0, 0, 1, 1], [], []>} : vector<20x128xf32>, vector<128x128xf32>, vector<20x128xf32> -> vector<20x128xf32>
    %80 = arith.addf %75, %79 : vector<20x128xf32>
    %c1_57 = arith.constant 1 : index
    %c0_58 = arith.constant 0 : index
    %c0_59 = arith.constant 0 : index
    %81 = vector.load %arg4[%c1_57, %c0_58, %c0_59] : memref<3x1x128xf32, #tpu.memory_space<vmem>>, vector<1x1x128xf32>
    %82 = vector.shape_cast %81 : vector<1x1x128xf32> to vector<1x128xf32>
    %83 = vector.broadcast %82 : vector<1x128xf32> to vector<20x128xf32>
    %84 = arith.addf %80, %83 : vector<20x128xf32>
    %85 = math.tanh %84 : vector<20x128xf32>
    %c1_60 = arith.constant 1 : index
    %c0_61 = arith.constant 0 : index
    %c0_62 = arith.constant 0 : index
    %86 = vector.load %arg5[%c1_60, %c0_61, %c0_62] : memref<3x1x128xf32, #tpu.memory_space<vmem>>, vector<1x1x128xf32>
    %87 = vector.shape_cast %86 : vector<1x1x128xf32> to vector<1x128xf32>
    %88 = vector.broadcast %87 : vector<1x128xf32> to vector<20x128xf32>
    %89 = arith.mulf %85, %88 : vector<20x128xf32>
    %c1_63 = arith.constant 1 : index
    %c0_64 = arith.constant 0 : index
    %c0_65 = arith.constant 0 : index
    %90 = vector.load %arg6[%c1_63, %c0_64, %c0_65] : memref<3x1x128xf32, #tpu.memory_space<vmem>>, vector<1x1x128xf32>
    %91 = vector.shape_cast %90 : vector<1x1x128xf32> to vector<1x128xf32>
    %92 = vector.broadcast %91 : vector<1x128xf32> to vector<20x128xf32>
    %93 = arith.addf %89, %92 : vector<20x128xf32>
    %c4_i32 = arith.constant 4 : i32
    %94 = arith.addi %3, %c4_i32 : i32
    %95 = tpu.iota {dimensions = array<i32: 0>} : vector<20x1xi32>
    %96 = vector.broadcast %94 : i32 to vector<20x1xi32>
    %97 = arith.addi %96, %95 : vector<20x1xi32>
    %c0_i32_66 = arith.constant 0 : i32
    %98 = vector.broadcast %c0_i32_66 : i32 to vector<20x1xi32>
    %99 = arith.cmpi sge, %97, %98 : vector<20x1xi32>
    %c32_i32_67 = arith.constant 32 : i32
    %100 = vector.broadcast %c32_i32_67 : i32 to vector<20x1xi32>
    %101 = arith.cmpi slt, %97, %100 : vector<20x1xi32>
    %102 = arith.andi %99, %101 : vector<20x1xi1>
    %cst_68 = arith.constant 0.000000e+00 : f32
    %103 = vector.shape_cast %102 : vector<20x1xi1> to vector<20x1xi1>
    %104 = vector.broadcast %103 : vector<20x1xi1> to vector<20x128xi1>
    %105 = vector.broadcast %cst_68 : f32 to vector<20x128xf32>
    %106 = arith.select %104, %93, %105 : vector<20x128xi1>, vector<20x128xf32>
    %107 = vector.extract_strided_slice %106 {offsets = [0, 0], sizes = [16, 128], strides = [1, 1]} : vector<20x128xf32> to vector<16x128xf32>
    %c2_69 = arith.constant 2 : index
    %c0_70 = arith.constant 0 : index
    %c0_71 = arith.constant 0 : index
    %c0_72 = arith.constant 0 : index
    %108 = vector.load %arg3[%c2_69, %c0_70, %c0_71, %c0_72] : memref<3x5x128x128xf32, #tpu.memory_space<vmem>>, vector<1x1x128x128xf32>
    %109 = vector.shape_cast %108 : vector<1x1x128x128xf32> to vector<128x128xf32>
    %cst_73 = arith.constant dense<0.000000e+00> : vector<16x128xf32>
    %110 = tpu.matmul %107, %109, %cst_73 {dimension_numbers = #tpu.dot_dimension_numbers<[1], [0], [0], [1], [0, 0, 1, 1], [], []>} : vector<16x128xf32>, vector<128x128xf32>, vector<16x128xf32> -> vector<16x128xf32>
    %111 = vector.extract_strided_slice %106 {offsets = [1, 0], sizes = [16, 128], strides = [1, 1]} : vector<20x128xf32> to vector<16x128xf32>
    %c2_74 = arith.constant 2 : index
    %c1_75 = arith.constant 1 : index
    %c0_76 = arith.constant 0 : index
    %c0_77 = arith.constant 0 : index
    %112 = vector.load %arg3[%c2_74, %c1_75, %c0_76, %c0_77] : memref<3x5x128x128xf32, #tpu.memory_space<vmem>>, vector<1x1x128x128xf32>
    %113 = vector.shape_cast %112 : vector<1x1x128x128xf32> to vector<128x128xf32>
    %cst_78 = arith.constant dense<0.000000e+00> : vector<16x128xf32>
    %114 = tpu.matmul %111, %113, %cst_78 {dimension_numbers = #tpu.dot_dimension_numbers<[1], [0], [0], [1], [0, 0, 1, 1], [], []>} : vector<16x128xf32>, vector<128x128xf32>, vector<16x128xf32> -> vector<16x128xf32>
    %115 = arith.addf %110, %114 : vector<16x128xf32>
    %116 = vector.extract_strided_slice %106 {offsets = [2, 0], sizes = [16, 128], strides = [1, 1]} : vector<20x128xf32> to vector<16x128xf32>
    %c2_79 = arith.constant 2 : index
    %c2_80 = arith.constant 2 : index
    %c0_81 = arith.constant 0 : index
    %c0_82 = arith.constant 0 : index
    %117 = vector.load %arg3[%c2_79, %c2_80, %c0_81, %c0_82] : memref<3x5x128x128xf32, #tpu.memory_space<vmem>>, vector<1x1x128x128xf32>
    %118 = vector.shape_cast %117 : vector<1x1x128x128xf32> to vector<128x128xf32>
    %cst_83 = arith.constant dense<0.000000e+00> : vector<16x128xf32>
    %119 = tpu.matmul %116, %118, %cst_83 {dimension_numbers = #tpu.dot_dimension_numbers<[1], [0], [0], [1], [0, 0, 1, 1], [], []>} : vector<16x128xf32>, vector<128x128xf32>, vector<16x128xf32> -> vector<16x128xf32>
    %120 = arith.addf %115, %119 : vector<16x128xf32>
    %121 = vector.extract_strided_slice %106 {offsets = [3, 0], sizes = [16, 128], strides = [1, 1]} : vector<20x128xf32> to vector<16x128xf32>
    %c2_84 = arith.constant 2 : index
    %c3_85 = arith.constant 3 : index
    %c0_86 = arith.constant 0 : index
    %c0_87 = arith.constant 0 : index
    %122 = vector.load %arg3[%c2_84, %c3_85, %c0_86, %c0_87] : memref<3x5x128x128xf32, #tpu.memory_space<vmem>>, vector<1x1x128x128xf32>
    %123 = vector.shape_cast %122 : vector<1x1x128x128xf32> to vector<128x128xf32>
    %cst_88 = arith.constant dense<0.000000e+00> : vector<16x128xf32>
    %124 = tpu.matmul %121, %123, %cst_88 {dimension_numbers = #tpu.dot_dimension_numbers<[1], [0], [0], [1], [0, 0, 1, 1], [], []>} : vector<16x128xf32>, vector<128x128xf32>, vector<16x128xf32> -> vector<16x128xf32>
    %125 = arith.addf %120, %124 : vector<16x128xf32>
    %126 = vector.extract_strided_slice %106 {offsets = [4, 0], sizes = [16, 128], strides = [1, 1]} : vector<20x128xf32> to vector<16x128xf32>
    %c2_89 = arith.constant 2 : index
    %c4_90 = arith.constant 4 : index
    %c0_91 = arith.constant 0 : index
    %c0_92 = arith.constant 0 : index
    %127 = vector.load %arg3[%c2_89, %c4_90, %c0_91, %c0_92] : memref<3x5x128x128xf32, #tpu.memory_space<vmem>>, vector<1x1x128x128xf32>
    %128 = vector.shape_cast %127 : vector<1x1x128x128xf32> to vector<128x128xf32>
    %cst_93 = arith.constant dense<0.000000e+00> : vector<16x128xf32>
    %129 = tpu.matmul %126, %128, %cst_93 {dimension_numbers = #tpu.dot_dimension_numbers<[1], [0], [0], [1], [0, 0, 1, 1], [], []>} : vector<16x128xf32>, vector<128x128xf32>, vector<16x128xf32> -> vector<16x128xf32>
    %130 = arith.addf %125, %129 : vector<16x128xf32>
    %c2_94 = arith.constant 2 : index
    %c0_95 = arith.constant 0 : index
    %c0_96 = arith.constant 0 : index
    %131 = vector.load %arg4[%c2_94, %c0_95, %c0_96] : memref<3x1x128xf32, #tpu.memory_space<vmem>>, vector<1x1x128xf32>
    %132 = vector.shape_cast %131 : vector<1x1x128xf32> to vector<1x128xf32>
    %133 = vector.broadcast %132 : vector<1x128xf32> to vector<16x128xf32>
    %134 = arith.addf %130, %133 : vector<16x128xf32>
    %c2_97 = arith.constant 2 : index
    %c0_98 = arith.constant 0 : index
    %c0_99 = arith.constant 0 : index
    %135 = vector.load %arg5[%c2_97, %c0_98, %c0_99] : memref<3x1x128xf32, #tpu.memory_space<vmem>>, vector<1x1x128xf32>
    %136 = vector.shape_cast %135 : vector<1x1x128xf32> to vector<1x128xf32>
    %137 = vector.broadcast %136 : vector<1x128xf32> to vector<16x128xf32>
    %138 = arith.mulf %134, %137 : vector<16x128xf32>
    %c2_100 = arith.constant 2 : index
    %c0_101 = arith.constant 0 : index
    %c0_102 = arith.constant 0 : index
    %139 = vector.load %arg6[%c2_100, %c0_101, %c0_102] : memref<3x1x128xf32, #tpu.memory_space<vmem>>, vector<1x1x128xf32>
    %140 = vector.shape_cast %139 : vector<1x1x128xf32> to vector<1x128xf32>
    %141 = vector.broadcast %140 : vector<1x128xf32> to vector<16x128xf32>
    %142 = arith.addf %138, %141 : vector<16x128xf32>
    %c0_103 = arith.constant 0 : index
    %c0_104 = arith.constant 0 : index
    %c0_105 = arith.constant 0 : index
    %143 = vector.load %arg7[%c0_103, %c0_104, %c0_105] : memref<1x16x128xf32, #tpu.memory_space<vmem>>, vector<1x16x128xf32>
    %144 = vector.shape_cast %143 : vector<1x16x128xf32> to vector<16x128xf32>
    %145 = vector.shape_cast %142 : vector<16x128xf32> to vector<1x16x128xf32>
    tpu.vector_store %arg7[%c0_103, %c0_104, %c0_105], %145 {strides = array<i32>} : memref<1x16x128xf32, #tpu.memory_space<vmem>>, vector<1x16x128xf32>,
    return
  }
  func.func @transform_0(%arg0: i32, %arg1: i32) -> (i32, i32, i32) {
    %c0_i32 = arith.constant 0 : i32
    %c0_i32_0 = arith.constant 0 : i32
    %c0_i32_1 = arith.constant 0 : i32
    return %arg0, %c0_i32, %c0_i32_0 : i32, i32, i32
  }
  func.func @transform_1(%arg0: i32, %arg1: i32) -> (i32, i32, i32, i32) {
    %c0_i32 = arith.constant 0 : i32
    %c0_i32_0 = arith.constant 0 : i32
    %c0_i32_1 = arith.constant 0 : i32
    %c0_i32_2 = arith.constant 0 : i32
    %c0_i32_3 = arith.constant 0 : i32
    return %c0_i32, %c0_i32_0, %c0_i32_1, %c0_i32_2 : i32, i32, i32, i32
  }
  func.func @transform_2(%arg0: i32, %arg1: i32) -> (i32, i32, i32) {
    %c0_i32 = arith.constant 0 : i32
    %c0_i32_0 = arith.constant 0 : i32
    %c0_i32_1 = arith.constant 0 : i32
    %c0_i32_2 = arith.constant 0 : i32
    return %c0_i32, %c0_i32_0, %c0_i32_1 : i32, i32, i32
  }
  func.func @transform_3(%arg0: i32, %arg1: i32) -> (i32, i32, i32) {
    %c0_i32 = arith.constant 0 : i32
    %c0_i32_0 = arith.constant 0 : i32
    %c0_i32_1 = arith.constant 0 : i32
    %c0_i32_2 = arith.constant 0 : i32
    return %c0_i32, %c0_i32_0, %c0_i32_1 : i32, i32, i32
  }
  func.func @transform_4(%arg0: i32, %arg1: i32) -> (i32, i32, i32) {
    %c0_i32 = arith.constant 0 : i32
    %c0_i32_0 = arith.constant 0 : i32
    %c0_i32_1 = arith.constant 0 : i32
    %c0_i32_2 = arith.constant 0 : i32
    return %c0_i32, %c0_i32_0, %c0_i32_1 : i32, i32, i32
  }
  func.func @transform_5(%arg0: i32, %arg1: i32) -> (i32, i32, i32) {
    %c0_i32 = arith.constant 0 : i32
    %c0_i32_0 = arith.constant 0 : i32
    return %arg0, %arg1, %c0_i32 : i32, i32, i32
  }
}

</mosaic_0001>

<bundles_post_ra>
// kernel: tpu_custom_call.1
= control target key start
LH: loop header
LB: loop body
LE: loop exit
PB: predicated region body
PF: predicated region fallthrough
CT: control target
= control target key end

     0   :  { %10 = vsyncpa [#allocation3], 0  ;;  %s3804_s0 = inlined_call_operand.vmem [shape: f32[2,44,128], index: 0, kind: input, shape index: {}]   ;;  %s3805_s1 = inlined_call_operand.hbm [shape: f32[3,5,128,128], index: 1, kind: input, shape index: {}]   ;;  %s3806_s2 = inlined_call_operand.vmem [shape: f32[3,1,128], index: 2, kind: input, shape index: {}]   ;;  %s3807_s3 = inlined_call_operand.vmem [shape: f32[3,1,128], index: 3, kind: input, shape index: {}]   ;;  %s3808_s4 = inlined_call_operand.vmem [shape: f32[3,1,128], index: 4, kind: input, shape index: {}]   ;;  %s3809_s5 = inlined_call_operand.hbm [shape: f32[2,32,128], index: 5, kind: output, shape index: {}]  }
   0x1   :  { %11 = vsyncpa [#allocation4], 0 }
   0x2   :  { %13 = vsyncpa [#allocation4 + $0x1], 0  ;;  %s3247_s18 = smov 0   ;;  %s3249_s19 = smov 0  }
   0x3   :  { %s3251_s20 = smov 0   ;;  %s3253_s21 = smov 0  }
   0x4   :  { %s3255_s22 = smov 0   ;;  %s3257_s23 = smov 0  }
   0x5   :  { %s3259_s24 = smov 0   ;;  %s3261_s25 = smov 0  }
   0x6 LB: > { %s2083_s26 = sadd.s32 4294967295, %s3207_s25   ;;  %s2084_s27 = sadd.s32 4294967294, %s3207_s25   ;;  %s3207_s25 = sphi %s3261_s25, %s19_s25   ;;  %s3203_s24 = sphi %s3259_s24, %s3821_s24   ;;  %s3199_s23 = sphi %s3257_s23, %s3820_s23   ;;  %s3195_s22 = sphi %s3255_s22, %s3819_s22   ;;  %s3191_s21 = sphi %s3253_s21, %s3818_s21   ;;  %s3187_s20 = sphi %s3251_s20, %s3817_s20   ;;  %s3183_s19 = sphi %s3249_s19, %s3816_s19   ;;  %s3179_s18 = sphi %s3247_s18, %s3815_s18  }
   0x7   : > { %s28_s28 = sadd.s32 1, %s3199_s23  ;;  %s31_s29 = sadd.s32 1, %s3203_s24 }
   0x8   : > { %p29_p0 = scmp.ge.s32.totalorder %s28_s28, 2  ;;  %s150_s30 = sadd.s32 1, %s3187_s20 }
   0x9   : > { %p160_p1 = scmp.ne.s32.totalorder %s3187_s20, %s3183_s19  ;;  %p161_p2 = scmp.eq.s32.totalorder %s2083_s26, 3 }
   0xa   : > { %s3823_s28 = smov (%p29_p0, %s28_s28), 0  ;;  %s3825_s29 = smov (!%p29_p0, %s31_s29), %s3203_s24 }
   0xb   : > { %s146_s6 = ssub.s32 %s3199_s23, %s3823_s28  ;;  %p3299_p3 = por %p161_p2, %p160_p1 }
   0xc   : > { %p33_p4 = scmp.ge.s32.totalorder %s3825_s29, 2  ;;  %p166_p5 = scmp.ne.s32.totalorder %s3183_s19, %s3179_s18 }
   0xd   : > { %p167_p6 = scmp.eq.s32.totalorder %s2084_s27, 3  ;;  %p2085_p7 = scmp.ge.s32.totalorder %s3207_s25, 1 }
   0xe   : > { %s3827_s29 = smov (%p33_p4, %s3825_s29), 0  ;;  %p174_p9 = scmp.lt.s32.totalorder %s3207_s25, 5 }
   0xf   : > { %p3308_p8 = por %p167_p6, %p166_p5  ;;  %s145_s9 = ssub.s32 %s3203_s24, %s3827_s29 }
  0x10   : > { %s147_s10 = sor.u32 %s146_s6, %s145_s9  ;;  %p3315_p10 = pnand %p2085_p7, %p174_p9 }
  0x11   : > { %p148_p11 = scmp.eq.s32.totalorder %s147_s10, 0  ;;  %p3319_p12 = scmp.eq.s32.totalorder %s2083_s26, 0 }
  0x12   : > { %p2991_p13 = pneg %p3315_p10  ;;  %s3209_s14 = smov [#allocation2]  }
  0x13   : > { %s3326_s13 = scalar_select %p148_p11, %s3187_s20, %s150_s30  }
  0x14   : > { %s186_s15 = sshll.u32 %s3209_s14, 4  ;;  %p3330_p0 = pnand %p3319_p12, %p2991_p13  ;;  %s187_s15 = int_to_ptr.vmem [resolvable:$true] %s186_s15 }
  0x15   : > { %s3096_s17 = scalar_lea.vmem %s187_s15, 30720  ;;  %p3104_p6 = scmp.lt.s32.totalorder %s187_s15, %s187_s15 }
  0x16   : > { %p3087_p1 = pneg %p3330_p0  ;;  %p3097_p2 = scmp.ne.s32.totalorder %s187_s15, %s3096_s17 }
  0x17   : > { %p3105_p7 = scmp.lt.s32.totalorder %s3096_s17, %s3096_s17 }
  0x18   : > { %p3099_p4 = pnand %p3097_p2, %p3087_p1 }
  0x19   : > { %p3106_p9 = por %p3105_p7, %p3104_p6 }
  0x1a   : > { %p3100_p5 = pneg %p3099_p4 }
  0x1c   : > { %p3107_p11 = pnand %p3106_p9, %p3100_p5 }
  0x1e   : > { %3110 = shalt.err (!%p3107_p11)
}
  0x1f   : > { %s3210_s26 = smov 128   ;;  %s3211_s27 = smov 8  }
  0x20   : > { %2994 = dma.hbm_to_vmem [thread:$0]  (!%p3330_p0), %s3805_s1, 30720, %s187_s15, [#allocation3], %s3210_s26, %s3210_s26, %s3211_s27  }
  0x21   : > { %219 = sbr.rel (%p3315_p10) target bundleno = 942 (0x3ae), region = 40 }
  0x26   : > { %3170 = dma.done.wait (%p3319_p12), [#allocation3], 30720  }
  0x27   : > { %3172 = vsyncadd (%p3319_p12), [#allocation3], 4294936576  ;;  %v3212_v0 = vmov 0.0   ;;  %p247_p13 = scmp.lt.s32.totalorder %s3195_s22, 1  ;;  %vm3213_vm0 = vmmov 0   ;;  %v291_v1 = vld [vmem:[#allocation2 + $0xf8] sm:$0xff] }
  0x28   : > { %2399 = vmatprep.subr.mxu0 %v3212_v0  ;;  %2440 = vmatprep.subr.mxu1 %v3212_v0  ;;  %v274_v2 = vld [vmem:[#allocation2 + $0x78] sm:$0xff]  ;;  %v290_v3 = vld [vmem:[#allocation2 + $0xf0] sm:$0xff]  ;;  %v289_v5 = vld [vmem:[#allocation2 + $0xe8] sm:$0xff]  ;;  %s3365_s15 = sshll.u32 %s3191_s21, 4  ;;  %vm706_vm1 = vcmask 1043456   ;;  %vm296_vm2 = vcmask 1046528  }
  0x29   : > { %2431 = vmatprep.mubr.msk.f32.mxu0 %vm3213_vm0, %v3212_v0  ;;  %2472 = vmatprep.mubr.msk.f32.mxu1 %vm3213_vm0, %v3212_v0  ;;  %s248_s9 = scalar_select %p247_p13, %s3195_s22, 1  ;;  %v273_v4 = vld [vmem:[#allocation2 + $0x70] sm:$0xff]  ;;  %v272_v6 = vld [vmem:[#allocation2 + $0x68] sm:$0xff]  ;;  %v288_v7 = vld [vmem:[#allocation2 + $0xe0] sm:$0xff]  ;;  %vm484_vm3 = vcmask 1045504   ;;  %vm595_vm4 = vcmask 1044480  }
  0x2a   : > { %2400 = vmatpush3.msra.mxu0 %v291_v1  ;;  %2441 = vmatpush3.msra.mxu1 %v274_v2  ;;  %v271_v8 = vld [vmem:[#allocation2 + $0x60] sm:$0xff]  ;;  %v287_v9 = vld [vmem:[#allocation2 + $0xd8] sm:$0xff]  ;;  %v286_v11 = vld [vmem:[#allocation2 + $0xd0] sm:$0xff]  ;;  %s833_s27 = sadd.s32 4294967292, %s3365_s15  ;;  %s2114_s6 = sshll.u32 %s3191_s21, 1 }
  0x2b   : > { %2401 = vmatprep.subr.mxu0 %v3212_v0  ;;  %2442 = vmatprep.subr.mxu1 %v3212_v0  ;;  %s2984_s10 = smul.u32 48, %s248_s9  ;;  %v270_v10 = vld [vmem:[#allocation2 + $0x58] sm:$0xff]  ;;  %v269_v12 = vld [vmem:[#allocation2 + $0x50] sm:$0xff]  ;;  %v285_v13 = vld [vmem:[#allocation2 + $0xc8] sm:$0xff]  ;;  %s2115_s9 = sshll.u32 %s3195_s22, 2 }
  0x2c   : > { %2402 = vmatpush3.msra.mxu0 %v290_v3  ;;  %2443 = vmatpush3.msra.mxu1 %v273_v4  ;;  %v268_v14 = vld [vmem:[#allocation2 + $0x48] sm:$0xff]  ;;  %v284_v15 = vld [vmem:[#allocation2 + $0xc0] sm:$0xff]  ;;  %v283_v21 = vld [vmem:[#allocation2 + $0xb8] sm:$0xff] }
  0x2d   : > { %2403 = vmatprep.subr.mxu0 %v3212_v0  ;;  %2444 = vmatprep.subr.mxu1 %v3212_v0  ;;  %s251_s14 = scalar_lea.vmem %s3804_s0, %s2984_s10  ;;  %v267_v16 = vld [vmem:[#allocation2 + $0x40] sm:$0xff]  ;;  %v266_v22 = vld [vmem:[#allocation2 + $0x38] sm:$0xff]  ;;  %v282_v24 = vld [vmem:[#allocation2 + $0xb0] sm:$0xff] }
  0x2e   : > { %2404 = vmatpush3.msra.mxu0 %v289_v5  ;;  %2445 = vmatpush3.msra.mxu1 %v272_v6  ;;  %s3370_s16 = scalar_lea.vmem %s251_s14, %s3365_s15  ;;  %v265_v25 = vld [vmem:[#allocation2 + $0x30] sm:$0xff]  ;;  %v281_v26 = vld [vmem:[#allocation2 + $0xa8] sm:$0xff]  ;;  %v280_v28 = vld [vmem:[#allocation2 + $0xa0] sm:$0xff]  ;;  %s1425_s14 = sadd.s32 4294967294, %s3365_s15 }
  0x2f   : > { %2405 = vmatprep.subr.mxu0 %v3212_v0  ;;  %2446 = vmatprep.subr.mxu1 %v3212_v0  ;;  %v3377_v17 = vld [vmem:[%s3370_s16] sm:$0xff]  ;;  %v3380_v18 = vld [vmem:[%s3370_s16 + $0x8] sm:$0xff]  ;;  %v279_v30 = vld [vmem:[#allocation2 + $0x98] sm:$0xff] }
  0x30   : > { %2406 = vmatpush3.msra.mxu0 %v288_v7  ;;  %2447 = vmatpush3.msra.mxu1 %v271_v8  ;;  %v707_v19 = vrot.slane %v3377_v17, 4  ;;  %v708_v20 = vrot.slane %v3380_v18, 4  ;;  %v264_v27 = vld [vmem:[#allocation2 + $0x28] sm:$0xff]  ;;  %v263_v29 = vld [vmem:[#allocation2 + $0x20] sm:$0xff]  ;;  %v262_v31 = vld [vmem:[#allocation2 + $0x18] sm:$0xff]  ;;  %v297_v34 = vrot.slane %v3377_v17, 1 }
  0x31   : > { %2407 = vmatprep.subr.mxu0 %v3212_v0  ;;  %2448 = vmatprep.subr.mxu1 %v3212_v0  ;;  %v278_v32 = vld [vmem:[#allocation2 + $0x90] sm:$0xff]  ;;  %v298_v35 = vrot.slane %v3380_v18, 1  ;;  %v277_v36 = vld [vmem:[#allocation2 + $0x88] sm:$0xff]  ;;  %v276_v38 = vld [vmem:[#allocation2 + $0x80] sm:$0xff] }
  0x32   : > { %2408 = vmatpush3.msra.mxu0 %v287_v9  ;;  %2449 = vmatpush3.msra.mxu1 %v270_v10  ;;  %v3389_v23 = vsel %vm706_vm1, %v707_v19, %v708_v20  ;;  %v261_v33 = vld [vmem:[#allocation2 + $0x10] sm:$0xff]  ;;  %v260_v37 = vld [vmem:[#allocation2 + $0x8] sm:$0xff]  ;;  %v259_v39 = vld [vmem:[#allocation2] sm:$0xff]  ;;  %v597_v19 = vrot.slane %v3380_v18, 3 }
  0x33   : > { %2409 = vmatprep.subr.mxu0 %v3212_v0  ;;  %2450 = vmatprep.subr.mxu1 %v3212_v0  ;;  %v299_v40 = vsel %vm296_vm2, %v297_v34, %v298_v35  ;;  %v483_v41 = vld [vmem:[#allocation2 + $0x178] sm:$0xff]  ;;  %v482_v42 = vld [vmem:[#allocation2 + $0x170] sm:$0xff]  ;;  %v481_v44 = vld [vmem:[#allocation2 + $0x168] sm:$0xff] }
  0x34   : > { %2410 = vmatpush3.msra.mxu0 %v286_v11  ;;  %2451 = vmatpush3.msra.mxu1 %v269_v12  ;;  %v594_v43 = vld [vmem:[#allocation2 + $0x1f8] sm:$0xff]  ;;  %v593_v45 = vld [vmem:[#allocation2 + $0x1f0] sm:$0xff]  ;;  %v480_v46 = vld [vmem:[#allocation2 + $0x160] sm:$0xff]  ;;  %v485_v11 = vrot.slane %v3377_v17, 2  ;;  %v486_v12 = vrot.slane %v3380_v18, 2 }
  0x35   : > { %2411 = vmatprep.subr.mxu0 %v3212_v0  ;;  %2452 = vmatprep.subr.mxu1 %v3212_v0  ;;  %v592_v47 = vld [vmem:[#allocation2 + $0x1e8] sm:$0xff]  ;;  %v479_v48 = vld [vmem:[#allocation2 + $0x158] sm:$0xff]  ;;  %v591_v49 = vld [vmem:[#allocation2 + $0x1e0] sm:$0xff] }
  0x36   : > { %2412 = vmatpush3.msra.mxu0 %v285_v13  ;;  %2453 = vmatpush3.msra.mxu1 %v268_v14  ;;  %v478_v50 = vld [vmem:[#allocation2 + $0x150] sm:$0xff]  ;;  %v590_v51 = vld [vmem:[#allocation2 + $0x1d8] sm:$0xff]  ;;  %v477_v52 = vld [vmem:[#allocation2 + $0x148] sm:$0xff] }
  0x37   : > { %2413 = vmatprep.subr.mxu0 %v3212_v0  ;;  %2454 = vmatprep.subr.mxu1 %v3212_v0  ;;  %v589_v53 = vld [vmem:[#allocation2 + $0x1d0] sm:$0xff]  ;;  %v476_v54 = vld [vmem:[#allocation2 + $0x140] sm:$0xff]  ;;  %v588_v55 = vld [vmem:[#allocation2 + $0x1c8] sm:$0xff] }
  0x38   : > { %2414 = vmatpush3.msra.mxu0 %v284_v15  ;;  %2455 = vmatpush3.msra.mxu1 %v267_v16  ;;  %v3427_v56 = vld [vmem:[%s3370_s16 + $0x10] sm:$0xff]  ;;  %v475_v57 = vld [vmem:[#allocation2 + $0x138] sm:$0xff]  ;;  %v587_v58 = vld [vmem:[#allocation2 + $0x1c0] sm:$0xff]  ;;  %v596_v16 = vrot.slane %v3377_v17, 3 }
  0x39   : > { %2415 = vmatprep.subr.mxu0 %v3212_v0  ;;  %2456 = vmatprep.subr.mxu1 %v3212_v0  ;;  %v474_v59 = vld [vmem:[#allocation2 + $0x130] sm:$0xff]  ;;  %v586_v60 = vld [vmem:[#allocation2 + $0x1b8] sm:$0xff]  ;;  %v300_v61 = vrot.slane %v3427_v56, 1  ;;  %v473_v62 = vld [vmem:[#allocation2 + $0x128] sm:$0xff] }
  0x3a   : > { %2416 = vmatpush3.msra.mxu0 %v283_v21  ;;  %2457 = vmatpush3.msra.mxu1 %v266_v22  ;;  %v585_v63 = vld [vmem:[#allocation2 + $0x1b0] sm:$0xff]  ;;  %v3437_v1 = vld [vmem:[%s3370_s16 + $0x18] sm:$0xf]  ;;  %v472_v3 = vld [vmem:[#allocation2 + $0x120] sm:$0xff]  ;;  %v487_v22 = vsel %vm484_vm3, %v485_v11, %v486_v12  ;;  %s1990_s16 = sadd.s32 %s2115_s9, %s2114_s6  ;;  %s3214_s9 = smov [#allocation5]  }
  0x3b   : > { %2417 = vmatprep.subr.mxu0 %v3212_v0  ;;  %2458 = vmatprep.subr.mxu1 %v3212_v0  ;;  %v301_v2 = vsel %vm296_vm2, %v298_v35, %v300_v61  ;;  %v584_v4 = vld [vmem:[#allocation2 + $0x1a8] sm:$0xff]  ;;  %v302_v5 = vrot.slane %v3437_v1, 1  ;;  %v471_v6 = vld [vmem:[#allocation2 + $0x118] sm:$0xff]  ;;  %v583_v7 = vld [vmem:[#allocation2 + $0x1a0] sm:$0xff]  ;;  %s2116_s15 = sshll.u32 %s1990_s16, 7 }
  0x3c   : > { %2418 = vmatpush3.msra.mxu0 %v282_v24  ;;  %2459 = vmatpush3.msra.mxu1 %v265_v25  ;;  %v470_v9 = vld [vmem:[#allocation2 + $0x110] sm:$0xff]  ;;  %v582_v10 = vld [vmem:[#allocation2 + $0x198] sm:$0xff]  ;;  %v469_v13 = vld [vmem:[#allocation2 + $0x108] sm:$0xff]  ;;  %v488_v25 = vrot.slane %v3427_v56, 2  ;;  %s3747_s12 = scalar_lea.hbm %s3809_s5, %s2116_s15 }
  0x3d   : > { %2419 = vmatprep.subr.mxu0 %v3212_v0  ;;  %2460 = vmatprep.subr.mxu1 %v3212_v0  ;;  %v303_v8 = vsel %vm296_vm2, %v300_v61, %v302_v5  ;;  %v581_v14 = vld [vmem:[#allocation2 + $0x190] sm:$0xff]  ;;  %v468_v15 = vld [vmem:[#allocation2 + $0x100] sm:$0xff]  ;;  %v580_v21 = vld [vmem:[#allocation2 + $0x188] sm:$0xff] }
  0x3e   : > { %2420 = vmatpush3.msra.mxu0 %v281_v26  ;;  %2461 = vmatpush3.msra.mxu1 %v264_v27  ;;  %v579_v24 = vld [vmem:[#allocation2 + $0x180] sm:$0xff]  ;;  %v598_v26 = vsel %vm595_vm4, %v596_v16, %v597_v19  ;;  %v599_v27 = vrot.slane %v3427_v56, 3  ;;  %v883_v11 = vld [vmem:[#allocation2 + $0x328] sm:$0xff]  ;;  %v880_v16 = vld [vmem:[#allocation2 + $0x310] sm:$0xff] }
  0x3f   : > { %2421 = vmatprep.subr.mxu0 %v3212_v0  ;;  %2462 = vmatprep.subr.mxu1 %v3212_v0  ;;  %v702_v34 = vld [vmem:[#allocation2 + $0x260] sm:$0xff] }
  0x40   : > { %2422 = vmatpush3.msra.mxu0 %v280_v28  ;;  %2463 = vmatpush3.msra.mxu1 %v263_v29  ;;  %v704_v28 = vld [vmem:[#allocation2 + $0x270] sm:$0xff]  ;;  %v489_v29 = vsel %vm484_vm3, %v486_v12, %v488_v25  ;;  %v869_v61 = vld [vmem:[#allocation2 + $0x2c0] sm:$0xff]  ;;  %v862_v12 = vld [vmem:[#allocation2 + $0x288] sm:$0xff] }
  0x41   : > { %2423 = vmatprep.subr.mxu0 %v3212_v0  ;;  %2464 = vmatprep.subr.mxu1 %v3212_v0  ;;  %v886_v5 = vld [vmem:[#allocation2 + $0x340] sm:$0xff] }
  0x42   : > { %2424 = vmatpush3.msra.mxu0 %v279_v30  ;;  %2465 = vmatpush3.msra.mxu1 %v262_v31  ;;  %v490_v30 = vrot.slane %v3437_v1, 2  ;;  %v703_v31 = vld [vmem:[#allocation2 + $0x268] sm:$0xff] }
  0x43   : > { %2425 = vmatprep.subr.mxu0 %v3212_v0  ;;  %2466 = vmatprep.subr.mxu1 %v3212_v0 }
  0x44   : > { %2426 = vmatpush3.msra.mxu0 %v278_v32  ;;  %2467 = vmatpush3.msra.mxu1 %v261_v33  ;;  %v600_v32 = vsel %vm595_vm4, %v597_v19, %v599_v27  ;;  %v601_v33 = vrot.slane %v3437_v1, 3  ;;  %v491_v35 = vsel %vm484_vm3, %v488_v25, %v490_v30  ;;  %v879_v19 = vld [vmem:[#allocation2 + $0x308] sm:$0xff] }
  0x45   : > { %2427 = vmatprep.subr.mxu0 %v3212_v0  ;;  %2468 = vmatprep.subr.mxu1 %v3212_v0 }
  0x46   : > { %2428 = vmatpush3.msra.mxu0 %v277_v36  ;;  %2469 = vmatpush3.msra.mxu1 %v260_v37  ;;  %v701_v36 = vld [vmem:[#allocation2 + $0x258] sm:$0xff]  ;;  %v602_v37 = vsel %vm595_vm4, %v599_v27, %v601_v33 }
  0x47   : > { %2429 = vmatprep.subr.mxu0 %v3212_v0  ;;  %2470 = vmatprep.subr.mxu1 %v3212_v0 }
  0x48   : > { %2430 = vmatpush3.msra.mxu0 %v276_v38  ;;  %2471 = vmatpush3.msra.mxu1 %v259_v39  ;;  %v700_v38 = vld [vmem:[#allocation2 + $0x250] sm:$0xff]  ;;  %v699_v39 = vld [vmem:[#allocation2 + $0x248] sm:$0xff] }
  0x49   : > { %2432 = vmatmul.mubr.f32.vlgmr.msra.gmra.mxu0 %v299_v40  ;;  %2481 = vmatprep.subr.mxu0 %v3212_v0  ;;  %v698_v40 = vld [vmem:[#allocation2 + $0x240] sm:$0xff] }
  0x4a   : > { %2473 = vmatmul.mubr.f32.vlgmr.msra.gmra.mxu1 %v3377_v17  ;;  %2482 = vmatpush3.msra.mxu0 %v483_v41  ;;  %v705_v17 = vld [vmem:[#allocation2 + $0x278] sm:$0xff] }
  0x4b   : > { %2483 = vmatprep.subr.mxu0 %v3212_v0  ;;  %2522 = vmatprep.subr.mxu1 %v3212_v0  ;;  %v697_v41 = vld [vmem:[#allocation2 + $0x238] sm:$0xff] }
  0x4c   : > { %2484 = vmatpush3.msra.mxu0 %v482_v42  ;;  %2523 = vmatpush3.msra.mxu1 %v594_v43  ;;  %v696_v42 = vld [vmem:[#allocation2 + $0x230] sm:$0xff]  ;;  %v695_v43 = vld [vmem:[#allocation2 + $0x228] sm:$0xff] }
  0x4d   : > { %2485 = vmatprep.subr.mxu0 %v3212_v0  ;;  %2524 = vmatprep.subr.mxu1 %v3212_v0 }
  0x4e   : > { %2486 = vmatpush3.msra.mxu0 %v481_v44  ;;  %2525 = vmatpush3.msra.mxu1 %v593_v45  ;;  %v694_v44 = vld [vmem:[#allocation2 + $0x220] sm:$0xff]  ;;  %v693_v45 = vld [vmem:[#allocation2 + $0x218] sm:$0xff] }
  0x4f   : > { %2487 = vmatprep.subr.mxu0 %v3212_v0  ;;  %2526 = vmatprep.subr.mxu1 %v3212_v0 }
  0x50   : > { %2488 = vmatpush3.msra.mxu0 %v480_v46  ;;  %2527 = vmatpush3.msra.mxu1 %v592_v47  ;;  %v692_v46 = vld [vmem:[#allocation2 + $0x210] sm:$0xff]  ;;  %v691_v47 = vld [vmem:[#allocation2 + $0x208] sm:$0xff] }
  0x51   : > { %2489 = vmatprep.subr.mxu0 %v3212_v0  ;;  %2528 = vmatprep.subr.mxu1 %v3212_v0 }
  0x52   : > { %2490 = vmatpush3.msra.mxu0 %v479_v48  ;;  %2529 = vmatpush3.msra.mxu1 %v591_v49  ;;  %v690_v48 = vld [vmem:[#allocation2 + $0x200] sm:$0xff]  ;;  %v710_v49 = vrot.slane %v3427_v56, 4 }
  0x53   : > { %2491 = vmatprep.subr.mxu0 %v3212_v0  ;;  %2530 = vmatprep.subr.mxu1 %v3212_v0 }
  0x54   : > { %2492 = vmatpush3.msra.mxu0 %v478_v50  ;;  %2531 = vmatpush3.msra.mxu1 %v590_v51  ;;  %v711_v50 = vsel %vm706_vm1, %v708_v20, %v710_v49  ;;  %v712_v51 = vrot.slane %v3437_v1, 4  ;;  %v873_v20 = vld [vmem:[#allocation2 + $0x2e0] sm:$0xff]  ;;  %v888_v1 = vld [vmem:[#allocation2 + $0x350] sm:$0xff] }
  0x55   : > { %2493 = vmatprep.subr.mxu0 %v3212_v0  ;;  %2532 = vmatprep.subr.mxu1 %v3212_v0 }
  0x56   : > { %2494 = vmatpush3.msra.mxu0 %v477_v52  ;;  %2533 = vmatpush3.msra.mxu1 %v589_v53  ;;  %v713_v52 = vsel %vm706_vm1, %v710_v49, %v712_v51  ;;  %v875_v53 = vld [vmem:[#allocation2 + $0x2f0] sm:$0xff] }
  0x57   : > { %2495 = vmatprep.subr.mxu0 %v3212_v0  ;;  %2534 = vmatprep.subr.mxu1 %v3212_v0 }
  0x58   : > { %2496 = vmatpush3.msra.mxu0 %v476_v54  ;;  %2535 = vmatpush3.msra.mxu1 %v588_v55  ;;  %v893_v54 = vld [vmem:[#allocation2 + $0x378] sm:$0xff] }
  0x59   : > { %2497 = vmatprep.subr.mxu0 %v3212_v0  ;;  %2536 = vmatprep.subr.mxu1 %v3212_v0  ;;  %v872_v55 = vld [vmem:[#allocation2 + $0x2d8] sm:$0xff] }
  0x5a   : > { %2498 = vmatpush3.msra.mxu0 %v475_v57  ;;  %2537 = vmatpush3.msra.mxu1 %v587_v58  ;;  %v871_v57 = vld [vmem:[#allocation2 + $0x2d0] sm:$0xff]  ;;  %v891_v58 = vld [vmem:[#allocation2 + $0x368] sm:$0xff] }
  0x5b   : > { %2499 = vmatprep.subr.mxu0 %v3212_v0  ;;  %2538 = vmatprep.subr.mxu1 %v3212_v0 }
  0x5c   : > { %2500 = vmatpush3.msra.mxu0 %v474_v59  ;;  %2539 = vmatpush3.msra.mxu1 %v586_v60  ;;  %v870_v59 = vld [vmem:[#allocation2 + $0x2c8] sm:$0xff]  ;;  %v890_v60 = vld [vmem:[#allocation2 + $0x360] sm:$0xff] }
  0x5d   : > { %2501 = vmatprep.subr.mxu0 %v3212_v0  ;;  %2540 = vmatprep.subr.mxu1 %v3212_v0 }
  0x5e   : > { %2502 = vmatpush3.msra.mxu0 %v473_v62  ;;  %2541 = vmatpush3.msra.mxu1 %v585_v63  ;;  %v889_v62 = vld [vmem:[#allocation2 + $0x358] sm:$0xff] }
  0x5f   : > { %2434 = vmatprep.mubr.msk.f32.mxu0 %vm3213_vm0, %v3212_v0  ;;  %2503 = vmatprep.subr.mxu0 %v3212_v0  ;;  %v868_v63 = vld [vmem:[#allocation2 + $0x2b8] sm:$0xff] }
  0x60   : > { %2542 = vmatprep.subr.mxu1 %v3212_v0  ;;  %2435 = vmatmul.mubr.f32.gmra.mxu0 %v301_v2  ;;  %v867_v2 = vld [vmem:[#allocation2 + $0x2b0] sm:$0xff] }
  0x61   : > { %2504 = vmatpush3.msra.mxu0 %v472_v3  ;;  %2543 = vmatpush3.msra.mxu1 %v584_v4  ;;  %v887_v3 = vld [vmem:[#allocation2 + $0x348] sm:$0xff] }
  0x62   : > { %2475 = vmatprep.mubr.msk.f32.mxu1 %vm3213_vm0, %v3212_v0  ;;  %2505 = vmatprep.subr.mxu0 %v3212_v0  ;;  %v866_v4 = vld [vmem:[#allocation2 + $0x2a8] sm:$0xff] }
  0x63   : > { %2544 = vmatprep.subr.mxu1 %v3212_v0  ;;  %2476 = vmatmul.mubr.f32.gmra.mxu1 %v3380_v18  ;;  %v874_v18 = vld [vmem:[#allocation2 + $0x2e8] sm:$0xff] }
  0x64   : > { %2506 = vmatpush3.msra.mxu0 %v471_v6  ;;  %2545 = vmatpush3.msra.mxu1 %v583_v7  ;;  %v865_v6 = vld [vmem:[#allocation2 + $0x2a0] sm:$0xff]  ;;  %v885_v7 = vld [vmem:[#allocation2 + $0x338] sm:$0xff] }
  0x65   : > { %2437 = vmatprep.mubr.msk.f32.mxu0 %vm3213_vm0, %v3212_v0  ;;  %2507 = vmatprep.subr.mxu0 %v3212_v0 }
  0x66   : > { %2546 = vmatprep.subr.mxu1 %v3212_v0  ;;  %2438 = vmatmul.mubr.f32.gmra.mxu0 %v303_v8  ;;  %v864_v8 = vld [vmem:[#allocation2 + $0x298] sm:$0xff] }
  0x67   : > { %2508 = vmatpush3.msra.mxu0 %v470_v9  ;;  %2547 = vmatpush3.msra.mxu1 %v582_v10  ;;  %v884_v9 = vld [vmem:[#allocation2 + $0x330] sm:$0xff] }
  0x68   : > { %2478 = vmatprep.mubr.msk.f32.mxu1 %vm3213_vm0, %v3212_v0  ;;  %2509 = vmatprep.subr.mxu0 %v3212_v0  ;;  %v863_v10 = vld [vmem:[#allocation2 + $0x290] sm:$0xff] }
  0x69   : > { %2548 = vmatprep.subr.mxu1 %v3212_v0  ;;  %2479 = vmatmul.mubr.f32.gmra.mxu1 %v3427_v56  ;;  %v892_v56 = vld [vmem:[#allocation2 + $0x370] sm:$0xff] }
  0x6a   : > { %2510 = vmatpush3.msra.mxu0 %v469_v13  ;;  %2549 = vmatpush3.msra.mxu1 %v581_v14  ;;  %v882_v13 = vld [vmem:[#allocation2 + $0x320] sm:$0xff] }
  0x6b   : > { %2511 = vmatprep.subr.mxu0 %v3212_v0  ;;  %2550 = vmatprep.subr.mxu1 %v3212_v0  ;;  %v861_v14 = vld [vmem:[#allocation2 + $0x280] sm:$0xff] }
  0x6c   : > { %2512 = vmatpush3.msra.mxu0 %v468_v15  ;;  %2513 = vmatprep.mubr.msk.f32.mxu0 %vm3213_vm0, %v3212_v0  ;;  %v881_v15 = vld [vmem:[#allocation2 + $0x318] sm:$0xff] }
  0x6d   : > { %2551 = vmatpush3.msra.mxu1 %v580_v21  ;;  %2514 = vmatmul.mubr.f32.vlgmr.msra.gmra.mxu0 %v487_v22  ;;  %v878_v21 = vld [vmem:[#allocation2 + $0x300] sm:$0xff] }
  0x6e   : > { %2552 = vmatprep.subr.mxu1 %v3212_v0  ;;  %2563 = vmatprep.subr.mxu0 %v3212_v0 }
  0x6f   : > { %2553 = vmatpush3.msra.mxu1 %v579_v24  ;;  %2554 = vmatprep.mubr.msk.f32.mxu1 %vm3213_vm0, %v3212_v0 }
  0x70   : > { %2564 = vmatpush3.msra.mxu0 %v705_v17  ;;  %2555 = vmatmul.mubr.f32.vlgmr.msra.gmra.mxu1 %v598_v26 }
  0x71   : > { %2565 = vmatprep.subr.mxu0 %v3212_v0  ;;  %2516 = vmatprep.mubr.msk.f32.mxu0 %vm3213_vm0, %v3212_v0 }
  0x72   : > { %2566 = vmatpush3.msra.mxu0 %v704_v28  ;;  %2557 = vmatprep.mubr.msk.f32.mxu1 %vm3213_vm0, %v3212_v0 }
  0x73   : > { %2517 = vmatmul.mubr.f32.gmra.mxu0 %v489_v29  ;;  %2567 = vmatprep.subr.mxu0 %v3212_v0 }
  0x74   : > { %2568 = vmatpush3.msra.mxu0 %v703_v31  ;;  %2558 = vmatmul.mubr.f32.gmra.mxu1 %v600_v32 }
  0x75   : > { %2569 = vmatprep.subr.mxu0 %v3212_v0  ;;  %2519 = vmatprep.mubr.msk.f32.mxu0 %vm3213_vm0, %v3212_v0 }
  0x76   : > { %2570 = vmatpush3.msra.mxu0 %v702_v34  ;;  %2560 = vmatprep.mubr.msk.f32.mxu1 %vm3213_vm0, %v3212_v0 }
  0x77   : > { %2520 = vmatmul.mubr.f32.gmra.mxu0 %v491_v35  ;;  %2571 = vmatprep.subr.mxu0 %v3212_v0 }
  0x78   : > { %2572 = vmatpush3.msra.mxu0 %v701_v36  ;;  %2561 = vmatmul.mubr.f32.gmra.mxu1 %v602_v37 }
  0x79   : > { %2573 = vmatprep.subr.mxu0 %v3212_v0  ;;  %2595 = vmatprep.mubr.msk.f32.mxu0 %vm3213_vm0, %v3212_v0 }
  0x7a   : > { %2574 = vmatpush3.msra.mxu0 %v700_v38  ;;  %2604 = vmatprep.subr.mxu1 %v3212_v0 }
  0x7b   : > { %2575 = vmatprep.subr.mxu0 %v3212_v0  ;;  %2636 = vmatprep.mubr.msk.f32.mxu1 %vm3213_vm0, %v3212_v0 }
  0x7c   : > { %2576 = vmatpush3.msra.mxu0 %v699_v39  ;;  %2605 = vmatpush3.msra.mxu1 %v893_v54 }
  0x7d   : > { %2577 = vmatprep.subr.mxu0 %v3212_v0  ;;  %2606 = vmatprep.subr.mxu1 %v3212_v0 }
  0x7e   : > { %2578 = vmatpush3.msra.mxu0 %v698_v40  ;;  %2607 = vmatpush3.msra.mxu1 %v892_v56 }
  0x7f   : > { %2579 = vmatprep.subr.mxu0 %v3212_v0  ;;  %2608 = vmatprep.subr.mxu1 %v3212_v0 }
  0x80   : > { %2580 = vmatpush3.msra.mxu0 %v697_v41  ;;  %2609 = vmatpush3.msra.mxu1 %v891_v58  ;;  %v834_v58 = vlaneseq }
  0x81   : > { %2581 = vmatprep.subr.mxu0 %v3212_v0  ;;  %2610 = vmatprep.subr.mxu1 %v3212_v0 }
  0x82   : > { %2582 = vmatpush3.msra.mxu0 %v696_v42  ;;  %2611 = vmatpush3.msra.mxu1 %v890_v60 }
  0x83   : > { %2583 = vmatprep.subr.mxu0 %v3212_v0  ;;  %2612 = vmatprep.subr.mxu1 %v3212_v0 }
  0x84   : > { %2584 = vmatpush3.msra.mxu0 %v695_v43  ;;  %2613 = vmatpush3.msra.mxu1 %v889_v62 }
  0x85   : > { %2585 = vmatprep.subr.mxu0 %v3212_v0  ;;  %2614 = vmatprep.subr.mxu1 %v3212_v0 }
  0x86   : > { %2586 = vmatpush3.msra.mxu0 %v694_v44  ;;  %2615 = vmatpush3.msra.mxu1 %v888_v1  ;;  %v3564_v1 = vshrl.u32 %v834_v58, 7  ;;  %v1175_v58 = vld [vmem:[#allocation2 + $0x408] sm:$0xff] }
  0x87   : > { %2587 = vmatprep.subr.mxu0 %v3212_v0  ;;  %2616 = vmatprep.subr.mxu1 %v3212_v0 }
  0x88   : > { %2588 = vmatpush3.msra.mxu0 %v693_v45  ;;  %2617 = vmatpush3.msra.mxu1 %v887_v3 }
  0x89   : > { %2589 = vmatprep.subr.mxu0 %v3212_v0  ;;  %2618 = vmatprep.subr.mxu1 %v3212_v0 }
  0x8a   : > { %2590 = vmatpush3.msra.mxu0 %v692_v46  ;;  %2619 = vmatpush3.msra.mxu1 %v886_v5 }
  0x8b   : > { %2591 = vmatprep.subr.mxu0 %v3212_v0  ;;  %2620 = vmatprep.subr.mxu1 %v3212_v0 }
  0x8c   : > { %2592 = vmatpush3.msra.mxu0 %v691_v47  ;;  %2621 = vmatpush3.msra.mxu1 %v885_v7  ;;  %v2094_v7 = vld [vmem:[%s3807_s3] ss:$0 sm:$0xff] }
  0x8d   : > { %2593 = vmatprep.subr.mxu0 %v3212_v0  ;;  %2622 = vmatprep.subr.mxu1 %v3212_v0 }
  0x8e   : > { %2594 = vmatpush3.msra.mxu0 %v690_v48  ;;  %2623 = vmatpush3.msra.mxu1 %v884_v9  ;;  %v3575_v9 = vadd.s32 16, %v3564_v1 }
  0x8f   : > { %2596 = vmatmul.mubr.f32.vlgmr.msra.gmra.mxu0 %v3389_v23  ;;  %2645 = vmatprep.subr.mxu0 %v3212_v0  ;;  %v876_v23 = vld [vmem:[#allocation2 + $0x2f8] sm:$0xff] }
  0x90   : > { %2598 = vmatprep.mubr.msk.f32.mxu0 %vm3213_vm0, %v3212_v0  ;;  %2646 = vmatpush3.msra.mxu0 %v876_v23 }
  0x91   : > { %2647 = vmatprep.subr.mxu0 %v3212_v0  ;;  %2624 = vmatprep.subr.mxu1 %v3212_v0 }
  0x92   : > { %2648 = vmatpush3.msra.mxu0 %v875_v53  ;;  %2625 = vmatpush3.msra.mxu1 %v883_v11  ;;  %v2095_v11 = vld [vmem:[%s3808_s4] ss:$0 sm:$0xff] }
  0x93   : > { %2599 = vmatmul.mubr.f32.gmra.mxu0 %v711_v50  ;;  %2649 = vmatprep.subr.mxu0 %v3212_v0 }
  0x94   : > { %2601 = vmatprep.mubr.msk.f32.mxu0 %vm3213_vm0, %v3212_v0  ;;  %2650 = vmatpush3.msra.mxu0 %v874_v18 }
  0x95   : > { %2651 = vmatprep.subr.mxu0 %v3212_v0  ;;  %2626 = vmatprep.subr.mxu1 %v3212_v0 }
  0x96   : > { %2652 = vmatpush3.msra.mxu0 %v873_v20  ;;  %2627 = vmatpush3.msra.mxu1 %v882_v13 }
  0x97   : > { %2602 = vmatmul.mubr.f32.gmra.mxu0 %v713_v52  ;;  %2653 = vmatprep.subr.mxu0 %v3212_v0  ;;  %v2093_v52 = vld [vmem:[%s3806_s2] ss:$0 sm:$0xff] }
  0x98   : > { %2677 = vmatprep.mubr.msk.f32.mxu0 %vm3213_vm0, %v3212_v0  ;;  %2654 = vmatpush3.msra.mxu0 %v872_v55 }
  0x99   : > { %2655 = vmatprep.subr.mxu0 %v3212_v0  ;;  %2628 = vmatprep.subr.mxu1 %v3212_v0 }
  0x9a   : > { %2656 = vmatpush3.msra.mxu0 %v871_v57  ;;  %2629 = vmatpush3.msra.mxu1 %v881_v15 }
  0x9b   : > { %2657 = vmatprep.subr.mxu0 %v3212_v0  ;;  %2630 = vmatprep.subr.mxu1 %v3212_v0 }
  0x9c   : > { %2658 = vmatpush3.msra.mxu0 %v870_v59  ;;  %2631 = vmatpush3.msra.mxu1 %v880_v16 }
  0x9d   : > { %2659 = vmatprep.subr.mxu0 %v3212_v0  ;;  %2632 = vmatprep.subr.mxu1 %v3212_v0 }
  0x9e   : > { %2660 = vmatpush3.msra.mxu0 %v869_v61  ;;  %2633 = vmatpush3.msra.mxu1 %v879_v19  ;;  %v1188_v19 = vld [vmem:[#allocation2 + $0x470] sm:$0xff] }
  0x9f   : > { %2661 = vmatprep.subr.mxu0 %v3212_v0  ;;  %2634 = vmatprep.subr.mxu1 %v3212_v0 }
  0xa0   : > { %2662 = vmatpush3.msra.mxu0 %v868_v63  ;;  %2635 = vmatpush3.msra.mxu1 %v878_v21 }
  0xa1   : > { %2663 = vmatprep.subr.mxu0 %v3212_v0  ;;  %2686 = vmatprep.subr.mxu1 %v3212_v0 }
  0xa2   : > { %2664 = vmatpush3.msra.mxu0 %v867_v2  ;;  %v838_v2 = vstv %s833_s27  ;;  %s244_s27 = sand.u32 1, %s3183_s19  }
  0xa3   : > { %2665 = vmatprep.subr.mxu0 %v3212_v0  ;;  %v839_v5 = vadd.s32 %v838_v2, %v3564_v1  ;;  %v841_v15 = vadd.s32 %v838_v2, %v3575_v9  ;;  %s2090_s30 = sshll.u32 %s244_s27, 4 }
  0xa4   : > { %2666 = vmatpush3.msra.mxu0 %v866_v4  ;;  %s246_s22 = scalar_lea.vmem [#allocation5], %s2090_s30  ;;  %s3753_s30 = scalar_lea.sflag [#allocation4], %s244_s27 }
  0xa5   : > { %2667 = vmatprep.subr.mxu0 %v3212_v0  ;;  %vm842_vm5 = vcmp.ge.s32.totalorder %v839_v5, 0  ;;  %vm845_vm6 = vcmp.lt.s32.totalorder %v839_v5, 32  ;;  %vm844_vm11 = vcmp.ge.s32.totalorder %v841_v15, 0  ;;  %vm847_vm12 = vcmp.lt.s32.totalorder %v841_v15, 32  ;;  %v1068_v5 = vld [vmem:[#allocation2 + $0x390] sm:$0xff]  ;;  %s1993_s26 = sshll.u32 %s246_s22, 4  ;;  %s3749_s26 = int_to_ptr.vmem [resolvable:$true] %s1993_s26 }
  0xa6   : > { %2668 = vmatpush3.msra.mxu0 %v865_v6  ;;  %v3568_v6 = vadd.s32 8, %v3564_v1  ;;  %vm848_vm7 = vmand %vm842_vm5, %vm845_vm6  ;;  %s3111_s6 = scalar_lea.vmem %s3749_s26, 256 }
  0xa7   : > { %2669 = vmatprep.subr.mxu0 %v3212_v0  ;;  %vm850_vm13 = vmand %vm844_vm11, %vm847_vm12  ;;  %p3112_p10 = scmp.ne.s32.totalorder %s3749_s26, %s3111_s6 }
  0xa8   : > { %2670 = vmatpush3.msra.mxu0 %v864_v8  ;;  %v840_v8 = vadd.s32 %v838_v2, %v3568_v6  ;;  %v1069_v2 = vld [vmem:[#allocation2 + $0x398] sm:$0xff] }
  0xa9   : > { %2671 = vmatprep.subr.mxu0 %v3212_v0  ;;  %p3113_p12 = pnand %p3112_p10, %p3299_p3 }
  0xaa   : > { %2672 = vmatpush3.msra.mxu0 %v863_v10  ;;  %vm843_vm8 = vcmp.ge.s32.totalorder %v840_v8, 0  ;;  %vm846_vm9 = vcmp.lt.s32.totalorder %v840_v8, 32 }
  0xab   : > { %2673 = vmatprep.subr.mxu0 %v3212_v0  ;;  %vm849_vm10 = vmand %vm843_vm8, %vm846_vm9  ;;  %p3114_p0 = pneg %p3113_p12 }
  0xac   : > { %2674 = vmatpush3.msra.mxu0 %v862_v12 }
  0xad   : > { %2675 = vmatprep.subr.mxu0 %v3212_v0 }
  0xae   : > { %2676 = vmatpush3.msra.mxu0 %v861_v14  ;;  %v1189_v14 = vld [vmem:[#allocation2 + $0x478] sm:$0xff] }
  0xaf   : > { %2727 = vmatprep.subr.mxu0 %v3212_v0 }
 0x109   : > { %v373_v22 = vpop.f32.mrf.mxu0 }
 0x10a   : > { %v453_v24 = vpop.f32.mrf.mxu1 }
 0x10b   : > { %v2433_v25 = vpop.f32.mrf.mxu0  ;;  %v454_v46 = vadd.f32 %v453_v24, %v373_v22 }
 0x10c   : > { %v2474_v17 = vpop.f32.mrf.mxu1  ;;  %v1187_v25 = vld [vmem:[#allocation2 + $0x468] sm:$0xff] }
 0x120   : > { %v378_v26 = vpop.f32.mrf.mxu0 }
 0x122   : > { %v2436_v27 = vpop.f32.mrf.mxu0 }
 0x123   : > { %v458_v28 = vpop.f32.mrf.mxu1  ;;  %v1186_v27 = vld [vmem:[#allocation2 + $0x460] sm:$0xff] }
 0x124   : > { %v459_v48 = vadd.f32 %v458_v28, %v378_v26 }
 0x125   : > { %v2477_v29 = vpop.f32.mrf.mxu1 }
 0x126   : > { %v383_v30 = vpop.f32.mrf.mxu0 }
 0x128   : > { %v2439_v31 = vpop.f32.mrf.mxu0 }
 0x129   : > { %v463_v32 = vpop.f32.mrf.mxu1 }
 0x12a   : > { %v464_v23 = vadd.f32 %v463_v32, %v383_v30 }
 0x12b   : > { %v2480_v33 = vpop.f32.mrf.mxu1 }
 0x12d   : > { %v561_v34 = vpop.f32.mrf.mxu0 }
 0x12e   : > { %v575_v47 = vadd.f32 %v561_v34, %v454_v46  ;;  %v1081_v34 = vld [vmem:[#allocation2 + $0x3f8] sm:$0xff] }
 0x12f   : > { %v2515_v35 = vpop.f32.mrf.mxu0 }
 0x130   : > { %v672_v36 = vpop.f32.mrf.mxu1 }
 0x131   : > { %v686_v49 = vadd.f32 %v672_v36, %v575_v47  ;;  %v1185_v36 = vld [vmem:[#allocation2 + $0x458] sm:$0xff]  ;;  %v1182_v47 = vld [vmem:[#allocation2 + $0x440] sm:$0xff] }
 0x132   : > { %v2556_v37 = vpop.f32.mrf.mxu1 }
 0x133   : > { %v566_v38 = vpop.f32.mrf.mxu0 }
 0x134   : > { %v677_v39 = vpop.f32.mrf.mxu1  ;;  %v576_v50 = vadd.f32 %v566_v38, %v459_v48  ;;  %v1078_v48 = vld [vmem:[#allocation2 + $0x3e0] sm:$0xff] }
 0x135   : > { %v2518_v40 = vpop.f32.mrf.mxu0 }
 0x136   : > { %v2559_v41 = vpop.f32.mrf.mxu1  ;;  %v687_v18 = vadd.f32 %v677_v39, %v576_v50  ;;  %v1080_v39 = vld [vmem:[#allocation2 + $0x3f0] sm:$0xff]  ;;  %v1077_v50 = vld [vmem:[#allocation2 + $0x3d8] sm:$0xff] }
 0x137   : > { %v571_v42 = vpop.f32.mrf.mxu0  ;;  %v1184_v40 = vld [vmem:[#allocation2 + $0x450] sm:$0xff] }
 0x138   : > { %v682_v43 = vpop.f32.mrf.mxu1  ;;  %v577_v20 = vadd.f32 %v571_v42, %v464_v23  ;;  %v1179_v23 = vld [vmem:[#allocation2 + $0x428] sm:$0xff] }
 0x139   : > { %v2521_v44 = vpop.f32.mrf.mxu0 }
 0x13a   : > { %v2562_v45 = vpop.f32.mrf.mxu1  ;;  %v688_v60 = vadd.f32 %v682_v43, %v577_v20  ;;  %v1183_v44 = vld [vmem:[#allocation2 + $0x448] sm:$0xff]  ;;  %v1177_v20 = vld [vmem:[#allocation2 + $0x418] sm:$0xff] }
 0x13b   : > { %v1079_v45 = vld [vmem:[#allocation2 + $0x3e8] sm:$0xff] }
 0x14f   : > { %v783_v51 = vpop.f32.mrf.mxu0 }
 0x150   : > { %v797_v53 = vadd.f32 %v783_v51, %v686_v49  ;;  %v1181_v49 = vld [vmem:[#allocation2 + $0x438] sm:$0xff]  ;;  %v1180_v51 = vld [vmem:[#allocation2 + $0x430] sm:$0xff] }
 0x151   : > { %v2597_v54 = vpop.f32.mrf.mxu0 }
 0x152   : > { %v807_v55 = vadd.f32 %v2093_v52, %v797_v53  ;;  %v1075_v53 = vld [vmem:[#allocation2 + $0x3c8] sm:$0xff]  ;;  %v1178_v54 = vld [vmem:[#allocation2 + $0x420] sm:$0xff] }
 0x153   : > { %v788_v56 = vpop.f32.mrf.mxu0 }
 0x154   : > { %3073 = vtanh.f32 %v807_v55  ;;  %v798_v57 = vadd.f32 %v788_v56, %v687_v18  ;;  %v1074_v18 = vld [vmem:[#allocation2 + $0x3c0] sm:$0xff]  ;;  %v1073_v55 = vld [vmem:[#allocation2 + $0x3b8] sm:$0xff]  ;;  %v1176_v56 = vld [vmem:[#allocation2 + $0x410] sm:$0xff] }
 0x155   : > { %v2600_v59 = vpop.f32.mrf.mxu0 }
 0x156   : > { %v808_v61 = vadd.f32 %v2093_v52, %v798_v57  ;;  %v1072_v57 = vld [vmem:[#allocation2 + $0x3b0] sm:$0xff]  ;;  %v1071_v59 = vld [vmem:[#allocation2 + $0x3a8] sm:$0xff] }
 0x157   : > { %v793_v62 = vpop.f32.mrf.mxu0 }
 0x158   : > { %3075 = vtanh.f32 %v808_v61  ;;  %v799_v63 = vadd.f32 %v793_v62, %v688_v60  ;;  %v1174_v61 = vld [vmem:[#allocation2 + $0x400] sm:$0xff] }
 0x159   : > { %v2603_v3 = vpop.f32.mrf.mxu0  ;;  %v1070_v62 = vld [vmem:[#allocation2 + $0x3a0] sm:$0xff] }
 0x15a   : > { %v809_v4 = vadd.f32 %v2093_v52, %v799_v63  ;;  %v1076_v52 = vld [vmem:[#allocation2 + $0x3d0] sm:$0xff] }
 0x15c   : > { %3077 = vtanh.f32 %v809_v4 }
 0x161   : > { %v3074_v10 = vpop.eup %3073 }
 0x162   : > { %v820_v12 = vmul.f32 %v3074_v10, %v2094_v7 }
 0x164   : > { %v830_v13 = vadd.f32 %v2095_v11, %v820_v12 }
 0x165   : > { %v3076_v16 = vpop.eup %3075 }
 0x166   : > { %2678 = vmatmul.mubr.msk.f32.vlgmr.msra.gmra.mxu0 %vm848_vm7, %v830_v13  ;;  %v821_v21 = vmul.f32 %v3076_v16, %v2094_v7  ;;  %v3583_v22 = vsel %vm848_vm7, %v830_v13, 0.0  ;;  %v1296_v16 = vld [vmem:[#allocation2 + $0x4f0] sm:$0xff] }
 0x167   : > { %2728 = vmatpush3.msra.mxu0 %v1189_v14  ;;  %2680 = vmatprep.mubr.msk.f32.mxu0 %vm3213_vm0, %v3212_v0  ;;  %v897_v31 = vrot.slane %v3583_v22, 1  ;;  %v1298_v32 = vrot.slane %v3583_v22, 4  ;;  %v1190_v63 = vrot.slane %v3583_v22, 3  ;;  %v1082_v12 = vrot.slane %v3583_v22, 2  ;;  %v1297_v14 = vld [vmem:[#allocation2 + $0x4f8] sm:$0xff]  ;;  %v1294_v22 = vld [vmem:[#allocation2 + $0x4e0] sm:$0xff] }
 0x168   : > { %2729 = vmatprep.subr.mxu0 %v3212_v0  ;;  %v831_v24 = vadd.f32 %v2095_v11, %v821_v21 }
 0x169   : > { %v3078_v17 = vpop.eup %3077  ;;  %2730 = vmatpush3.msra.mxu0 %v1188_v19  ;;  %v1295_v19 = vld [vmem:[#allocation2 + $0x4e8] sm:$0xff] }
 0x16a   : > { %2731 = vmatprep.subr.mxu0 %v3212_v0  ;;  %v3587_v26 = vsel %vm849_vm10, %v831_v24, 0.0  ;;  %2681 = vmatmul.mubr.msk.f32.gmra.mxu0 %vm849_vm10, %v831_v24  ;;  %v822_v28 = vmul.f32 %v3078_v17, %v2094_v7  ;;  %v1067_v7 = vld [vmem:[#allocation2 + $0x388] sm:$0xff]  ;;  %v1293_v24 = vld [vmem:[#allocation2 + $0x4d8] sm:$0xff] }
 0x16b   : > { %v898_v29 = vrot.slane %v3587_v26, 1  ;;  %v1299_v30 = vrot.slane %v3587_v26, 4  ;;  %2732 = vmatpush3.msra.mxu0 %v1187_v25  ;;  %2683 = vmatprep.mubr.msk.f32.mxu0 %vm3213_vm0, %v3212_v0  ;;  %v1191_v60 = vrot.slane %v3587_v26, 3  ;;  %v1083_v8 = vrot.slane %v3587_v26, 2  ;;  %v1292_v25 = vld [vmem:[#allocation2 + $0x4d0] sm:$0xff]  ;;  %v1291_v17 = vld [vmem:[#allocation2 + $0x4c8] sm:$0xff] }
 0x16c   : > { %2733 = vmatprep.subr.mxu0 %v3212_v0  ;;  %v832_v33 = vadd.f32 %v2095_v11, %v822_v28  ;;  %v1066_v11 = vld [vmem:[#allocation2 + $0x380] sm:$0xff]  ;;  %v1288_v28 = vld [vmem:[#allocation2 + $0x4b0] sm:$0xff] }
 0x16d   : > { %2734 = vmatpush3.msra.mxu0 %v1186_v27  ;;  %v899_v35 = vsel %vm296_vm2, %v897_v31, %v898_v29  ;;  %v3598_v37 = vsel %vm706_vm1, %v1298_v32, %v1299_v30  ;;  %v1192_v3 = vsel %vm595_vm4, %v1190_v63, %v1191_v60  ;;  %v1084_v13 = vsel %vm484_vm3, %v1082_v12, %v1083_v8  ;;  %v1290_v26 = vld [vmem:[#allocation2 + $0x4c0] sm:$0xff]  ;;  %v1289_v27 = vld [vmem:[#allocation2 + $0x4b8] sm:$0xff]  ;;  %v1284_v32 = vld [vmem:[#allocation2 + $0x490] sm:$0xff] }
 0x16e   : > { %2735 = vmatprep.subr.mxu0 %v3212_v0  ;;  %2637 = vmatmul.mubr.f32.vlgmr.msra.gmra.mxu1 %v899_v35  ;;  %v3601_v38 = vsel %vm850_vm13, %v832_v33, 0.0  ;;  %v1285_v31 = vld [vmem:[#allocation2 + $0x498] sm:$0xff]  ;;  %v1466_v63 = vld [vmem:[#allocation2 + $0x580] sm:$0xff] }
 0x16f   : > { %2684 = vmatmul.mubr.msk.f32.gmra.mxu0 %vm850_vm13, %v832_v33  ;;  %2687 = vmatpush3.msra.mxu1 %v1081_v34  ;;  %v900_v41 = vrot.slane %v3601_v38, 1  ;;  %v1301_v42 = vrot.slane %v3601_v38, 4  ;;  %v1193_v4 = vrot.slane %v3601_v38, 3  ;;  %v1085_v15 = vrot.slane %v3601_v38, 2  ;;  %v1283_v33 = vld [vmem:[#allocation2 + $0x488] sm:$0xff]  ;;  %v1282_v34 = vld [vmem:[#allocation2 + $0x480] sm:$0xff] }
 0x170   : > { %2736 = vmatpush3.msra.mxu0 %v1185_v36  ;;  %2688 = vmatprep.subr.mxu1 %v3212_v0  ;;  %v1464_v35 = vld [vmem:[#allocation2 + $0x578] sm:$0xff]  ;;  %v1463_v36 = vld [vmem:[#allocation2 + $0x570] sm:$0xff] }
 0x171   : > { %2737 = vmatprep.subr.mxu0 %v3212_v0  ;;  %2689 = vmatpush3.msra.mxu1 %v1080_v39  ;;  %v901_v43 = vsel %vm296_vm2, %v898_v29, %v900_v41  ;;  %v3613_v46 = vsel %vm706_vm1, %v1299_v30, %v1301_v42  ;;  %v1194_v10 = vsel %vm595_vm4, %v1191_v60, %v1193_v4  ;;  %v1287_v29 = vld [vmem:[#allocation2 + $0x4a8] sm:$0xff]  ;;  %v1286_v30 = vld [vmem:[#allocation2 + $0x4a0] sm:$0xff]  ;;  %v1459_v38 = vld [vmem:[#allocation2 + $0x550] sm:$0xff] }
 0x172   : > { %2738 = vmatpush3.msra.mxu0 %v1184_v40  ;;  %2639 = vmatprep.mubr.msk.f32.mxu1 %vm3213_vm0, %v3212_v0  ;;  %v1086_v21 = vsel %vm484_vm3, %v1083_v8, %v1085_v15  ;;  %v1462_v39 = vld [vmem:[#allocation2 + $0x568] sm:$0xff]  ;;  %v1481_v40 = vld [vmem:[#allocation2 + $0x5f8] sm:$0xff] }
 0x173   : > { %2690 = vmatprep.subr.mxu1 %v3212_v0  ;;  %2739 = vmatprep.subr.mxu0 %v3212_v0  ;;  %v3689_v60 = vld [vmem:[#allocation2 + $0x6f8] sm:$0xff] }
 0x174   : > { %2640 = vmatmul.mubr.f32.gmra.mxu1 %v901_v43  ;;  %2740 = vmatpush3.msra.mxu0 %v1183_v44  ;;  %v1458_v43 = vld [vmem:[#allocation2 + $0x548] sm:$0xff]  ;;  %v1478_v44 = vld [vmem:[#allocation2 + $0x5e0] sm:$0xff] }
 0x175   : > { %2691 = vmatpush3.msra.mxu1 %v1079_v45  ;;  %2741 = vmatprep.subr.mxu0 %v3212_v0  ;;  %v1457_v45 = vld [vmem:[#allocation2 + $0x540] sm:$0xff] }
 0x176   : > { %2692 = vmatprep.subr.mxu1 %v3212_v0  ;;  %2742 = vmatpush3.msra.mxu0 %v1182_v47  ;;  %v1456_v47 = vld [vmem:[#allocation2 + $0x538] sm:$0xff] }
 0x177   : > { %2693 = vmatpush3.msra.mxu1 %v1078_v48  ;;  %2642 = vmatprep.mubr.msk.f32.mxu1 %vm3213_vm0, %v3212_v0  ;;  %v1476_v48 = vld [vmem:[#allocation2 + $0x5d0] sm:$0xff] }
 0x178   : > { %2694 = vmatprep.subr.mxu1 %v3212_v0  ;;  %2743 = vmatprep.subr.mxu0 %v3212_v0 }
 0x179   : > { %2643 = vmatmul.mubr.f32.gmra.mxu1 %v900_v41  ;;  %2744 = vmatpush3.msra.mxu0 %v1181_v49  ;;  %v1460_v41 = vld [vmem:[#allocation2 + $0x558] sm:$0xff]  ;;  %v1455_v49 = vld [vmem:[#allocation2 + $0x530] sm:$0xff] }
 0x17a   : > { %2695 = vmatpush3.msra.mxu1 %v1077_v50  ;;  %2745 = vmatprep.subr.mxu0 %v3212_v0  ;;  %v1475_v50 = vld [vmem:[#allocation2 + $0x5c8] sm:$0xff] }
 0x17b   : > { %2696 = vmatprep.subr.mxu1 %v3212_v0  ;;  %2746 = vmatpush3.msra.mxu0 %v1180_v51  ;;  %v1454_v51 = vld [vmem:[#allocation2 + $0x528] sm:$0xff] }
 0x17c   : > { %2697 = vmatpush3.msra.mxu1 %v1076_v52  ;;  %2747 = vmatprep.subr.mxu0 %v3212_v0  ;;  %v1474_v52 = vld [vmem:[#allocation2 + $0x5c0] sm:$0xff] }
 0x17d   : > { %2698 = vmatprep.subr.mxu1 %v3212_v0  ;;  %2748 = vmatpush3.msra.mxu0 %v1179_v23  ;;  %v1453_v23 = vld [vmem:[#allocation2 + $0x520] sm:$0xff] }
 0x17e   : > { %2699 = vmatpush3.msra.mxu1 %v1075_v53  ;;  %2749 = vmatprep.subr.mxu0 %v3212_v0  ;;  %v1473_v53 = vld [vmem:[#allocation2 + $0x5b8] sm:$0xff] }
 0x17f   : > { %2700 = vmatprep.subr.mxu1 %v3212_v0  ;;  %2750 = vmatpush3.msra.mxu0 %v1178_v54  ;;  %v1452_v54 = vld [vmem:[#allocation2 + $0x518] sm:$0xff] }
 0x180   : > { %2701 = vmatpush3.msra.mxu1 %v1074_v18  ;;  %2751 = vmatprep.subr.mxu0 %v3212_v0  ;;  %v1472_v18 = vld [vmem:[#allocation2 + $0x5b0] sm:$0xff] }
 0x181   : > { %2702 = vmatprep.subr.mxu1 %v3212_v0  ;;  %2752 = vmatpush3.msra.mxu0 %v1177_v20  ;;  %v1451_v20 = vld [vmem:[#allocation2 + $0x510] sm:$0xff] }
 0x182   : > { %2703 = vmatpush3.msra.mxu1 %v1073_v55  ;;  %2753 = vmatprep.subr.mxu0 %v3212_v0  ;;  %v1471_v55 = vld [vmem:[#allocation2 + $0x5a8] sm:$0xff] }
 0x183   : > { %2704 = vmatprep.subr.mxu1 %v3212_v0  ;;  %2754 = vmatpush3.msra.mxu0 %v1176_v56  ;;  %v1450_v56 = vld [vmem:[#allocation2 + $0x508] sm:$0xff] }
 0x184   : > { %2705 = vmatpush3.msra.mxu1 %v1072_v57  ;;  %2755 = vmatprep.subr.mxu0 %v3212_v0  ;;  %v1470_v57 = vld [vmem:[#allocation2 + $0x5a0] sm:$0xff] }
 0x185   : > { %2706 = vmatprep.subr.mxu1 %v3212_v0  ;;  %2756 = vmatpush3.msra.mxu0 %v1175_v58  ;;  %v1449_v58 = vld [vmem:[#allocation2 + $0x500] sm:$0xff] }
 0x186   : > { %2707 = vmatpush3.msra.mxu1 %v1071_v59  ;;  %2757 = vmatprep.subr.mxu0 %v3212_v0  ;;  %v1469_v59 = vld [vmem:[#allocation2 + $0x598] sm:$0xff] }
 0x187   : > { %2708 = vmatprep.subr.mxu1 %v3212_v0  ;;  %2758 = vmatpush3.msra.mxu0 %v1174_v61  ;;  %v1468_v61 = vld [vmem:[#allocation2 + $0x590] sm:$0xff] }
 0x188   : > { %2709 = vmatpush3.msra.mxu1 %v1070_v62  ;;  %2759 = vmatprep.mubr.msk.f32.mxu0 %vm3213_vm0, %v3212_v0  ;;  %v1467_v62 = vld [vmem:[#allocation2 + $0x588] sm:$0xff] }
 0x189   : > { %2710 = vmatprep.subr.mxu1 %v3212_v0  ;;  %2760 = vmatmul.mubr.f32.vlgmr.msra.gmra.mxu0 %v1192_v3 }
 0x18a   : > { %2711 = vmatpush3.msra.mxu1 %v1069_v2  ;;  %2762 = vmatprep.mubr.msk.f32.mxu0 %vm3213_vm0, %v3212_v0  ;;  %v3692_v2 = vld [vmem:[#allocation2 + $0x678] sm:$0xff] }
 0x18b   : > { %2712 = vmatprep.subr.mxu1 %v3212_v0  ;;  %2718 = vmatprep.mubr.msk.f32.mxu1 %vm3213_vm0, %v3212_v0 }
 0x18c   : > { %2713 = vmatpush3.msra.mxu1 %v1068_v5  ;;  %2809 = vmatprep.subr.mxu0 %v1481_v40 }
 0x18d   : > { %2714 = vmatprep.subr.mxu1 %v3212_v0  ;;  %2763 = vmatmul.mubr.f32.gmra.mxu0 %v1194_v10 }
 0x18e   : > { %2715 = vmatpush3.msra.mxu1 %v1067_v7  ;;  %2765 = vmatprep.mubr.msk.f32.mxu0 %vm3213_vm0, %v3212_v0 }
 0x18f   : > { %2716 = vmatprep.subr.mxu1 %v3212_v0  ;;  %2810 = vmatpush3.msra.mxu0 %v1481_v40 }
 0x190   : > { %2717 = vmatpush3.msra.mxu1 %v1066_v11 }
 0x191   : > { %2719 = vmatmul.mubr.f32.vlgmr.msra.gmra.mxu1 %v1084_v13  ;;  %2766 = vmatmul.mubr.f32.gmra.mxu0 %v1193_v4 }
 0x192   : > { %2768 = vmatprep.subr.mxu1 %v3212_v0  ;;  %2721 = vmatprep.mubr.msk.f32.mxu1 %vm3213_vm0, %v3212_v0 }
 0x193   : > { %2769 = vmatpush3.msra.mxu1 %v1297_v14 }
 0x194   : > { %2770 = vmatprep.subr.mxu1 %v3212_v0 }
 0x195   : > { %2771 = vmatpush3.msra.mxu1 %v1296_v16 }
 0x196   : > { %2722 = vmatmul.mubr.f32.gmra.mxu1 %v1086_v21  ;;  %2772 = vmatprep.subr.mxu1 %v3212_v0 }
 0x197   : > { %2773 = vmatpush3.msra.mxu1 %v1295_v19  ;;  %2724 = vmatprep.mubr.msk.f32.mxu1 %vm3213_vm0, %v3212_v0 }
 0x198   : > { %2774 = vmatprep.subr.mxu1 %v3212_v0 }
 0x199   : > { %2775 = vmatpush3.msra.mxu1 %v1294_v22 }
 0x19a   : > { %2725 = vmatmul.mubr.f32.gmra.mxu1 %v1085_v15  ;;  %2776 = vmatprep.subr.mxu1 %v3212_v0 }
 0x19b   : > { %2777 = vmatpush3.msra.mxu1 %v1293_v24  ;;  %2800 = vmatprep.mubr.msk.f32.mxu1 %vm3213_vm0, %v3212_v0 }
 0x19c   : > { %2778 = vmatprep.subr.mxu1 %v3212_v0 }
 0x19d   : > { %2779 = vmatpush3.msra.mxu1 %v1292_v25 }
 0x19e   : > { %2780 = vmatprep.subr.mxu1 %v3212_v0 }
 0x19f   : > { %2781 = vmatpush3.msra.mxu1 %v1291_v17 }
 0x1a0   : > { %2782 = vmatprep.subr.mxu1 %v3212_v0 }
 0x1a1   : > { %2783 = vmatpush3.msra.mxu1 %v1290_v26 }
 0x1a2   : > { %2784 = vmatprep.subr.mxu1 %v3212_v0 }
 0x1a3   : > { %2785 = vmatpush3.msra.mxu1 %v1289_v27 }
 0x1a4   : > { %2786 = vmatprep.subr.mxu1 %v3212_v0 }
 0x1a5   : > { %2787 = vmatpush3.msra.mxu1 %v1288_v28 }
 0x1a6   : > { %2788 = vmatprep.subr.mxu1 %v3212_v0 }
 0x1a7   : > { %2789 = vmatpush3.msra.mxu1 %v1287_v29 }
 0x1a8   : > { %2790 = vmatprep.subr.mxu1 %v3212_v0 }
 0x1a9   : > { %2791 = vmatpush3.msra.mxu1 %v1286_v30 }
 0x1aa   : > { %2792 = vmatprep.subr.mxu1 %v3212_v0 }
 0x1ab   : > { %2793 = vmatpush3.msra.mxu1 %v1285_v31 }
 0x1ac   : > { %2794 = vmatprep.subr.mxu1 %v3212_v0 }
 0x1ad   : > { %2795 = vmatpush3.msra.mxu1 %v1284_v32 }
 0x1ae   : > { %2796 = vmatprep.subr.mxu1 %v3212_v0 }
 0x1af   : > { %2797 = vmatpush3.msra.mxu1 %v1283_v33 }
 0x1b0   : > { %2798 = vmatprep.subr.mxu1 %v3212_v0 }
 0x1b1   : > { %2799 = vmatpush3.msra.mxu1 %v1282_v34 }
 0x1b2   : > { %2801 = vmatmul.mubr.f32.vlgmr.msra.gmra.mxu1 %v3598_v37  ;;  %2844 = vmatprep.subr.mxu1 %v1464_v35  ;;  %v1461_v37 = vld [vmem:[#allocation2 + $0x560] sm:$0xff] }
 0x1b3   : > { %2803 = vmatprep.mubr.msk.f32.mxu1 %vm3213_vm0, %v3212_v0  ;;  %2845 = vmatpush3.msra.mxu1 %v1464_v35 }
 0x1b4   : > { %2846 = vmatprep.subr.mxu1 %v1463_v36 }
 0x1b5   : > { %2847 = vmatpush3.msra.mxu1 %v1463_v36 }
 0x1b6   : > { %2804 = vmatmul.mubr.f32.gmra.mxu1 %v3613_v46  ;;  %2848 = vmatprep.subr.mxu1 %v1462_v39  ;;  %v1477_v46 = vld [vmem:[#allocation2 + $0x5d8] sm:$0xff] }
 0x1b7   : > { %2806 = vmatprep.mubr.msk.f32.mxu1 %vm3213_vm0, %v3212_v0  ;;  %2849 = vmatpush3.msra.mxu1 %v1462_v39  ;;  %v1480_v0 = vld [vmem:[#allocation2 + $0x5f0] sm:$0xff] }
 0x1b8   : > { %2850 = vmatprep.subr.mxu1 %v1461_v37  ;;  %2811 = vmatprep.subr.mxu0 %v1480_v0 }
 0x1b9   : > { %2851 = vmatpush3.msra.mxu1 %v1461_v37  ;;  %2812 = vmatpush3.msra.mxu0 %v1480_v0  ;;  %v2100_v37 = vld [vmem:[%s3806_s2 + $0x1] ss:$0 sm:$0xff] }
 0x1ba   : > { %2807 = vmatmul.mubr.f32.gmra.mxu1 %v1301_v42  ;;  %2852 = vmatprep.subr.mxu1 %v1460_v41  ;;  %v1479_v42 = vld [vmem:[#allocation2 + $0x5e8] sm:$0xff] }
 0x1bb   : > { %2853 = vmatpush3.msra.mxu1 %v1460_v41  ;;  %2813 = vmatprep.subr.mxu0 %v1479_v42 }
 0x1bc   : > { %2854 = vmatprep.subr.mxu1 %v1459_v38  ;;  %2814 = vmatpush3.msra.mxu0 %v1479_v42 }
 0x1bd   : > { %2855 = vmatpush3.msra.mxu1 %v1459_v38  ;;  %2815 = vmatprep.subr.mxu0 %v1478_v44 }
 0x1be   : > { %2856 = vmatprep.subr.mxu1 %v1458_v43  ;;  %2816 = vmatpush3.msra.mxu0 %v1478_v44 }
 0x1bf   : > { %2857 = vmatpush3.msra.mxu1 %v1458_v43  ;;  %2817 = vmatprep.subr.mxu0 %v1477_v46 }
 0x1c0   : > { %2858 = vmatprep.subr.mxu1 %v1457_v45  ;;  %2818 = vmatpush3.msra.mxu0 %v1477_v46 }
 0x1c1   : > { %2859 = vmatpush3.msra.mxu1 %v1457_v45  ;;  %2819 = vmatprep.subr.mxu0 %v1476_v48 }
 0x1c2   : > { %2860 = vmatprep.subr.mxu1 %v1456_v47  ;;  %2820 = vmatpush3.msra.mxu0 %v1476_v48 }
 0x1c3   : > { %2861 = vmatpush3.msra.mxu1 %v1456_v47  ;;  %2821 = vmatprep.subr.mxu0 %v1475_v50 }
 0x1c4   : > { %2862 = vmatprep.subr.mxu1 %v1455_v49  ;;  %2822 = vmatpush3.msra.mxu0 %v1475_v50 }
 0x1c5   : > { %2863 = vmatpush3.msra.mxu1 %v1455_v49  ;;  %2823 = vmatprep.subr.mxu0 %v1474_v52 }
 0x1c6   : > { %2864 = vmatprep.subr.mxu1 %v1454_v51  ;;  %2824 = vmatpush3.msra.mxu0 %v1474_v52  ;;  %v1426_v52 = vstv %s1425_s14  ;;  %s3115_s14 = sshll.u32 %s3214_s9, 4  ;;  %s3116_s14 = int_to_ptr.vmem [resolvable:$false] %s3115_s14 }
 0x1c7   : > { %2865 = vmatpush3.msra.mxu1 %v1454_v51  ;;  %2825 = vmatprep.subr.mxu0 %v1473_v53  ;;  %s3117_s16 = scalar_lea.vmem %s3116_s14, 512  ;;  %p3118_p1 = scmp.lt.s32.totalorder %s3749_s26, %s3116_s14 }
 0x1c8   : > { %2866 = vmatprep.subr.mxu1 %v1453_v23  ;;  %2826 = vmatpush3.msra.mxu0 %v1473_v53  ;;  %v1427_v53 = vadd.s32 %v1426_v52, %v3564_v1  ;;  %p3119_p2 = scmp.lt.s32.totalorder %s3117_s16, %s3111_s6 }
 0x1c9   : > { %2867 = vmatpush3.msra.mxu1 %v1453_v23  ;;  %2827 = vmatprep.subr.mxu0 %v1472_v18 }
 0x1ca   : > { %2868 = vmatprep.subr.mxu1 %v1452_v54  ;;  %2828 = vmatpush3.msra.mxu0 %v1472_v18  ;;  %v1428_v18 = vadd.s32 %v1426_v52, %v3568_v6  ;;  %vm1430_vm14 = vcmp.ge.s32.totalorder %v1427_v53, 0  ;;  %vm1433_vm15 = vcmp.lt.s32.totalorder %v1427_v53, 32  ;;  %v1645_v53 = vld [vmem:[#allocation2 + $0x610] sm:$0xff]  ;;  %p3120_p4 = por %p3119_p2, %p3118_p1 }
 0x1cb   : > { %2869 = vmatpush3.msra.mxu1 %v1452_v54  ;;  %2829 = vmatprep.subr.mxu0 %v1471_v55  ;;  %v2102_v54 = vld [vmem:[%s3807_s3 + $0x1] ss:$0 sm:$0xff]  ;;  %vm1436_vm0 = vmand %vm1430_vm14, %vm1433_vm15 }
 0x1cc   : > { %2870 = vmatprep.subr.mxu1 %v1451_v20  ;;  %2830 = vmatpush3.msra.mxu0 %v1471_v55  ;;  %v2104_v55 = vld [vmem:[%s3808_s4 + $0x1] ss:$0 sm:$0xff]  ;;  %vm1431_vm5 = vcmp.ge.s32.totalorder %v1428_v18, 0  ;;  %vm1434_vm6 = vcmp.lt.s32.totalorder %v1428_v18, 32  ;;  %p3121_p5 = pnand %p3120_p4, %p3114_p0 }
 0x1cd   : > { %2871 = vmatpush3.msra.mxu1 %v1451_v20  ;;  %2831 = vmatprep.subr.mxu0 %v1470_v57  ;;  %vm1437_vm7 = vmand %vm1431_vm5, %vm1434_vm6  ;;  %v1643_v18 = vld [vmem:[#allocation2 + $0x600] sm:$0xff] }
 0x1ce   : > { %2872 = vmatprep.subr.mxu1 %v1450_v56  ;;  %2832 = vmatpush3.msra.mxu0 %v1470_v57 }
 0x1cf   : > { %2873 = vmatpush3.msra.mxu1 %v1450_v56  ;;  %2833 = vmatprep.subr.mxu0 %v1469_v59 }
 0x1d0   : > { %2874 = vmatprep.subr.mxu1 %v1449_v58  ;;  %2834 = vmatpush3.msra.mxu0 %v1469_v59 }
 0x1d1   : > { %2875 = vmatpush3.msra.mxu1 %v1449_v58  ;;  %2835 = vmatprep.subr.mxu0 %v1468_v61  ;;  %v1429_v58 = vadd.s32 %v1426_v52, %v3575_v9  ;;  %v1757_v9 = vld [vmem:[#allocation2 + $0x6e8] sm:$0xff]  ;;  %v1744_v52 = vld [vmem:[#allocation2 + $0x680] sm:$0xff] }
 0x1d2   : > { %2914 = vmatprep.subr.mxu1 %v3689_v60  ;;  %2836 = vmatpush3.msra.mxu0 %v1468_v61 }
 0x1d3   : > { %2837 = vmatprep.subr.mxu0 %v1467_v62  ;;  %vm1432_vm8 = vcmp.ge.s32.totalorder %v1429_v58, 0  ;;  %vm1435_vm9 = vcmp.lt.s32.totalorder %v1429_v58, 32  ;;  %v1856_v58 = vld [vmem:[#allocation2 + $0x758] sm:$0xff] }
 0x1d4   : > { %2838 = vmatpush3.msra.mxu0 %v1467_v62  ;;  %vm1438_vm10 = vmand %vm1432_vm8, %vm1435_vm9 }
 0x1d5   : > { %2839 = vmatprep.subr.mxu0 %v1466_v63 }
 0x1d6   : > { %2840 = vmatpush3.msra.mxu0 %v1466_v63  ;;  %v1758_v63 = vld [vmem:[#allocation2 + $0x6f0] sm:$0xff] }
 0x1d7   : > { %2879 = vmatprep.subr.mxu0 %v3692_v2 }
 0x226   : > { %v1051_v3 = vpop.f32.mrf.mxu0 }
 0x228   : > { %v2679_v4 = vpop.f32.mrf.mxu0 }
 0x22a   : > { %v1056_v5 = vpop.f32.mrf.mxu0 }
 0x22c   : > { %v2682_v7 = vpop.f32.mrf.mxu0 }
 0x22e   : > { %v971_v8 = vpop.f32.mrf.mxu1 }
 0x22f   : > { %v1061_v10 = vpop.f32.mrf.mxu0  ;;  %v1052_v32 = vadd.f32 %v1051_v3, %v971_v8 }
 0x230   : > { %v2638_v11 = vpop.f32.mrf.mxu1 }
 0x231   : > { %v2685_v12 = vpop.f32.mrf.mxu0 }
 0x234   : > { %v976_v13 = vpop.f32.mrf.mxu1 }
 0x235   : > { %v1057_v34 = vadd.f32 %v1056_v5, %v976_v13 }
 0x236   : > { %v2641_v14 = vpop.f32.mrf.mxu1 }
 0x239   : > { %v981_v15 = vpop.f32.mrf.mxu1 }
 0x23a   : > { %v1062_v40 = vadd.f32 %v1061_v10, %v981_v15 }
 0x23b   : > { %v2644_v16 = vpop.f32.mrf.mxu1 }
 0x249   : > { %v1264_v19 = vpop.f32.mrf.mxu0 }
 0x24b   : > { %v2761_v21 = vpop.f32.mrf.mxu0 }
 0x24c   : > { %v1756_v21 = vld [vmem:[#allocation2 + $0x6e0] sm:$0xff] }
 0x24d   : > { %v1269_v22 = vpop.f32.mrf.mxu0 }
 0x24f   : > { %v2764_v24 = vpop.f32.mrf.mxu0 }
 0x251   : > { %v1156_v25 = vpop.f32.mrf.mxu1  ;;  %v1274_v17 = vpop.f32.mrf.mxu0 }
 0x252   : > { %v1170_v33 = vadd.f32 %v1156_v25, %v1052_v32 }
 0x253   : > { %v2720_v26 = vpop.f32.mrf.mxu1  ;;  %v2767_v27 = vpop.f32.mrf.mxu0 }
 0x254   : > { %v1278_v36 = vadd.f32 %v1264_v19, %v1170_v33 }
 0x256   : > { %v1161_v28 = vpop.f32.mrf.mxu1 }
 0x257   : > { %v1171_v35 = vadd.f32 %v1161_v28, %v1057_v34  ;;  %v1754_v34 = vld [vmem:[#allocation2 + $0x6d0] sm:$0xff] }
 0x258   : > { %v2723_v29 = vpop.f32.mrf.mxu1 }
 0x259   : > { %v1279_v43 = vadd.f32 %v1269_v22, %v1171_v35  ;;  %v1656_v35 = vld [vmem:[#allocation2 + $0x668] sm:$0xff] }
 0x25a   : > { %v1166_v30 = vpop.f32.mrf.mxu1 }
 0x25b   : > { %v1172_v38 = vadd.f32 %v1166_v30, %v1062_v40  ;;  %v1657_v30 = vld [vmem:[#allocation2 + $0x670] sm:$0xff]  ;;  %v1654_v40 = vld [vmem:[#allocation2 + $0x658] sm:$0xff] }
 0x25c   : > { %v2726_v31 = vpop.f32.mrf.mxu1 }
 0x25d   : > { %v1280_v48 = vadd.f32 %v1274_v17, %v1172_v38  ;;  %v1652_v38 = vld [vmem:[#allocation2 + $0x648] sm:$0xff] }
 0x272   : > { %v1372_v39 = vpop.f32.mrf.mxu1 }
 0x273   : > { %v1386_v41 = vadd.f32 %v1372_v39, %v1278_v36  ;;  %v1753_v36 = vld [vmem:[#allocation2 + $0x6c8] sm:$0xff]  ;;  %v1655_v39 = vld [vmem:[#allocation2 + $0x660] sm:$0xff] }
 0x274   : > { %v2802_v0 = vpop.f32.mrf.mxu1 }
 0x275   : > { %v1397_v42 = vadd.f32 %v2100_v37, %v1386_v41  ;;  %v1751_v41 = vld [vmem:[#allocation2 + $0x6b8] sm:$0xff]  ;;  %v1750_v0 = vld [vmem:[#allocation2 + $0x6b0] sm:$0xff] }
 0x276   : > { %v1377_v44 = vpop.f32.mrf.mxu1 }
 0x277   : > { %3079 = vtanh.f32 %v1397_v42  ;;  %v1387_v45 = vadd.f32 %v1377_v44, %v1279_v43  ;;  %v1749_v42 = vld [vmem:[#allocation2 + $0x6a8] sm:$0xff]  ;;  %v1651_v43 = vld [vmem:[#allocation2 + $0x640] sm:$0xff] }
 0x278   : > { %v2805_v46 = vpop.f32.mrf.mxu1  ;;  %v1748_v44 = vld [vmem:[#allocation2 + $0x6a0] sm:$0xff] }
 0x279   : > { %v1398_v47 = vadd.f32 %v2100_v37, %v1387_v45  ;;  %v1650_v45 = vld [vmem:[#allocation2 + $0x638] sm:$0xff] }
 0x27a   : > { %v1382_v49 = vpop.f32.mrf.mxu1  ;;  %v1747_v46 = vld [vmem:[#allocation2 + $0x698] sm:$0xff] }
 0x27b   : > { %3081 = vtanh.f32 %v1398_v47  ;;  %v1388_v50 = vadd.f32 %v1382_v49, %v1280_v48  ;;  %v1649_v47 = vld [vmem:[#allocation2 + $0x630] sm:$0xff]  ;;  %v1648_v49 = vld [vmem:[#allocation2 + $0x628] sm:$0xff] }
 0x27c   : > { %v2808_v51 = vpop.f32.mrf.mxu1  ;;  %v1746_v48 = vld [vmem:[#allocation2 + $0x690] sm:$0xff] }
 0x27d   : > { %v1399_v23 = vadd.f32 %v2100_v37, %v1388_v50  ;;  %v1752_v37 = vld [vmem:[#allocation2 + $0x6c0] sm:$0xff]  ;;  %v1745_v50 = vld [vmem:[#allocation2 + $0x688] sm:$0xff] }
 0x27e   : > { %v1647_v51 = vld [vmem:[#allocation2 + $0x620] sm:$0xff] }
 0x27f   : > { %3083 = vtanh.f32 %v1399_v23  ;;  %v1646_v23 = vld [vmem:[#allocation2 + $0x618] sm:$0xff] }
 0x284   : > { %v3080_v20 = vpop.eup %3079 }
 0x285   : > { %v1411_v56 = vmul.f32 %v3080_v20, %v2102_v54  ;;  %v1860_v20 = vld [vmem:[#allocation2 + $0x778] sm:$0xff] }
 0x287   : > { %v1422_v57 = vadd.f32 %v2104_v55, %v1411_v56  ;;  %v1858_v56 = vld [vmem:[#allocation2 + $0x768] sm:$0xff] }
 0x288   : > { %v3082_v1 = vpop.eup %3081 }
 0x289   : > { %v1412_v59 = vmul.f32 %v3082_v1, %v2102_v54  ;;  %v1445_v61 = vsel %vm1436_vm0, %v1422_v57, 0.0  ;;  %2876 = vmatprep.mubr.msk.f32.mxu1 %vm1436_vm0, %v1422_v57  ;;  %v1857_v57 = vld [vmem:[#allocation2 + $0x760] sm:$0xff]  ;;  %v1855_v1 = vld [vmem:[#allocation2 + $0x750] sm:$0xff] }
 0x28a   : > { %v1485_v3 = vrot.slane %v1445_v61, 1  ;;  %v1760_v4 = vrot.slane %v1445_v61, 3  ;;  %v1659_v8 = vrot.slane %v1445_v61, 2  ;;  %v1861_v10 = vrot.slane %v1445_v61, 4  ;;  %v1853_v61 = vld [vmem:[#allocation2 + $0x740] sm:$0xff] }
 0x28b   : > { %v1423_v6 = vadd.f32 %v2104_v55, %v1412_v59  ;;  %v1854_v59 = vld [vmem:[#allocation2 + $0x748] sm:$0xff] }
 0x28c   : > { %v3084_v62 = vpop.eup %3083 }
 0x28d   : > { %v1413_v5 = vmul.f32 %v3084_v62, %v2102_v54  ;;  %v1446_v7 = vsel %vm1437_vm7, %v1423_v6, 0.0  ;;  %2877 = vmatmul.mubr.msk.f32.vlgmr.msra.gmra.mxu1 %vm1437_vm7, %v1423_v6  ;;  %v1644_v54 = vld [vmem:[#allocation2 + $0x608] sm:$0xff]  ;;  %v1852_v6 = vld [vmem:[#allocation2 + $0x738] sm:$0xff]  ;;  %v1851_v62 = vld [vmem:[#allocation2 + $0x730] sm:$0xff] }
 0x28e   : > { %2915 = vmatpush3.msra.mxu1 %v3689_v60  ;;  %v1486_v11 = vrot.slane %v1446_v7, 1  ;;  %v1761_v12 = vrot.slane %v1446_v7, 3  ;;  %v1660_v13 = vrot.slane %v1446_v7, 2  ;;  %v1862_v14 = vrot.slane %v1446_v7, 4  ;;  %v1755_v60 = vld [vmem:[#allocation2 + $0x6d8] sm:$0xff]  ;;  %v1846_v7 = vld [vmem:[#allocation2 + $0x708] sm:$0xff] }
 0x28f   : > { %v1424_v15 = vadd.f32 %v2104_v55, %v1413_v5  ;;  %2916 = vmatprep.subr.mxu1 %v1758_v63  ;;  %v1859_v55 = vld [vmem:[#allocation2 + $0x770] sm:$0xff] }
 0x290   : > { %2917 = vmatpush3.msra.mxu1 %v1758_v63  ;;  %v1487_v16 = vsel %vm296_vm2, %v1485_v3, %v1486_v11  ;;  %v1762_v19 = vsel %vm595_vm4, %v1760_v4, %v1761_v12  ;;  %v1661_v22 = vsel %vm484_vm3, %v1659_v8, %v1660_v13  ;;  %v3713_v24 = vsel %vm706_vm1, %v1861_v10, %v1862_v14  ;;  %v1850_v63 = vld [vmem:[#allocation2 + $0x728] sm:$0xff]  ;;  %v1849_v3 = vld [vmem:[#allocation2 + $0x720] sm:$0xff]  ;;  %v1848_v4 = vld [vmem:[#allocation2 + $0x718] sm:$0xff] }
 0x291   : > { %v1447_v25 = vsel %vm1438_vm10, %v1424_v15, 0.0  ;;  %2918 = vmatprep.subr.mxu1 %v1757_v9  ;;  %2841 = vmatprep.mubr.f32.mxu0 %v1487_v16  ;;  %v1847_v5 = vld [vmem:[#allocation2 + $0x710] sm:$0xff]  ;;  %v1845_v8 = vld [vmem:[#allocation2 + $0x700] sm:$0xff] }
 0x292   : > { %2919 = vmatpush3.msra.mxu1 %v1757_v9  ;;  %2946 = vmatprep.mubr.f32.mxu1 %v1762_v19  ;;  %v1488_v17 = vrot.slane %v1447_v25, 1  ;;  %v1763_v26 = vrot.slane %v1447_v25, 3  ;;  %v1662_v27 = vrot.slane %v1447_v25, 2  ;;  %v1864_v28 = vrot.slane %v1447_v25, 4 }
 0x293   : > { %2920 = vmatprep.subr.mxu1 %v1756_v21 }
 0x294   : > { %2921 = vmatpush3.msra.mxu1 %v1756_v21  ;;  %v1489_v29 = vsel %vm296_vm2, %v1486_v11, %v1488_v17  ;;  %v3717_v31 = vsel %vm595_vm4, %v1761_v12, %v1763_v26  ;;  %v3720_v32 = vsel %vm484_vm3, %v1660_v13, %v1662_v27  ;;  %v3723_v33 = vsel %vm706_vm1, %v1862_v14, %v1864_v28  ;;  %v2108_v17 = vld [vmem:[%s3806_s2 + $0x2] ss:$0 sm:$0xff] }
 0x295   : > { %2922 = vmatprep.subr.mxu1 %v1755_v60  ;;  %2842 = vmatmul.mubr.f32.vlgmr.msra.gmra.mxu0 %v1489_v29  ;;  %v2110_v28 = vld [vmem:[%s3807_s3 + $0x2] ss:$0 sm:$0xff] }
 0x296   : > { %2880 = vmatpush3.msra.mxu0 %v3692_v2  ;;  %2923 = vmatpush3.msra.mxu1 %v1755_v60  ;;  %v1653_v2 = vld [vmem:[#allocation2 + $0x650] sm:$0xff] }
 0x297   : > { %2881 = vmatprep.subr.mxu0 %v1657_v30  ;;  %2911 = vmatprep.mubr.f32.mxu0 %v1661_v22 }
 0x298   : > { %2924 = vmatprep.subr.mxu1 %v1754_v34  ;;  %2882 = vmatpush3.msra.mxu0 %v1657_v30 }
 0x299   : > { %2925 = vmatpush3.msra.mxu1 %v1754_v34  ;;  %2883 = vmatprep.subr.mxu0 %v1656_v35 }
 0x29a   : > { %2926 = vmatprep.subr.mxu1 %v1753_v36  ;;  %2884 = vmatpush3.msra.mxu0 %v1656_v35 }
 0x29b   : > { %2927 = vmatpush3.msra.mxu1 %v1753_v36  ;;  %2885 = vmatprep.subr.mxu0 %v1655_v39 }
 0x29c   : > { %2928 = vmatprep.subr.mxu1 %v1752_v37  ;;  %2886 = vmatpush3.msra.mxu0 %v1655_v39 }
 0x29d   : > { %2929 = vmatpush3.msra.mxu1 %v1752_v37  ;;  %2887 = vmatprep.subr.mxu0 %v1654_v40 }
 0x29e   : > { %2930 = vmatprep.subr.mxu1 %v1751_v41  ;;  %2888 = vmatpush3.msra.mxu0 %v1654_v40 }
 0x29f   : > { %2931 = vmatpush3.msra.mxu1 %v1751_v41  ;;  %2889 = vmatprep.subr.mxu0 %v1653_v2 }
 0x2a0   : > { %2932 = vmatprep.subr.mxu1 %v1750_v0  ;;  %2890 = vmatpush3.msra.mxu0 %v1653_v2 }
 0x2a1   : > { %2933 = vmatpush3.msra.mxu1 %v1750_v0  ;;  %2891 = vmatprep.subr.mxu0 %v1652_v38 }
 0x2a2   : > { %2934 = vmatprep.subr.mxu1 %v1749_v42  ;;  %2892 = vmatpush3.msra.mxu0 %v1652_v38 }
 0x2a3   : > { %2935 = vmatpush3.msra.mxu1 %v1749_v42  ;;  %2893 = vmatprep.subr.mxu0 %v1651_v43 }
 0x2a4   : > { %2936 = vmatprep.subr.mxu1 %v1748_v44  ;;  %2894 = vmatpush3.msra.mxu0 %v1651_v43 }
 0x2a5   : > { %2937 = vmatpush3.msra.mxu1 %v1748_v44  ;;  %2895 = vmatprep.subr.mxu0 %v1650_v45 }
 0x2a6   : > { %2938 = vmatprep.subr.mxu1 %v1747_v46  ;;  %2896 = vmatpush3.msra.mxu0 %v1650_v45 }
 0x2a7   : > { %2939 = vmatpush3.msra.mxu1 %v1747_v46  ;;  %2897 = vmatprep.subr.mxu0 %v1649_v47 }
 0x2a8   : > { %2940 = vmatprep.subr.mxu1 %v1746_v48  ;;  %2898 = vmatpush3.msra.mxu0 %v1649_v47 }
 0x2a9   : > { %2941 = vmatpush3.msra.mxu1 %v1746_v48  ;;  %2899 = vmatprep.subr.mxu0 %v1648_v49 }
 0x2aa   : > { %2942 = vmatprep.subr.mxu1 %v1745_v50  ;;  %2900 = vmatpush3.msra.mxu0 %v1648_v49 }
 0x2ab   : > { %2943 = vmatpush3.msra.mxu1 %v1745_v50  ;;  %2901 = vmatprep.subr.mxu0 %v1647_v51 }
 0x2ac   : > { %2944 = vmatprep.subr.mxu1 %v1744_v52  ;;  %2902 = vmatpush3.msra.mxu0 %v1647_v51 }
 0x2ad   : > { %2945 = vmatpush3.msra.mxu1 %v1744_v52  ;;  %2903 = vmatprep.subr.mxu0 %v1646_v23 }
 0x2ae   : > { %2947 = vmatmul.mubr.f32.vlgmr.msra.gmra.mxu1 %v3717_v31  ;;  %2904 = vmatpush3.msra.mxu0 %v1646_v23 }
 0x2af   : > { %2905 = vmatprep.subr.mxu0 %v1645_v53 }
 0x2b0   : > { %2906 = vmatpush3.msra.mxu0 %v1645_v53 }
 0x2b1   : > { %2907 = vmatprep.subr.mxu0 %v1644_v54 }
 0x2b2   : > { %2908 = vmatpush3.msra.mxu0 %v1644_v54 }
 0x2b3   : > { %2909 = vmatprep.subr.mxu0 %v1643_v18 }
 0x2b4   : > { %2910 = vmatpush3.msra.mxu0 %v1643_v18 }
 0x2b5   : > { %2912 = vmatmul.mubr.f32.vlgmr.msra.gmra.mxu0 %v3720_v32  ;;  %2949 = vmatprep.subr.mxu0 %v1860_v20  ;;  %v2112_v32 = vld [vmem:[%s3808_s4 + $0x2] ss:$0 sm:$0xff] }
 0x2b6   : > { %2950 = vmatpush3.msra.mxu0 %v1860_v20  ;;  %2981 = vmatprep.mubr.f32.mxu0 %v3713_v24 }
 0x2b7   : > { %2951 = vmatprep.subr.mxu0 %v1859_v55 }
 0x2b8   : > { %2952 = vmatpush3.msra.mxu0 %v1859_v55 }
 0x2b9   : > { %2953 = vmatprep.subr.mxu0 %v1858_v56 }
 0x2ba   : > { %2954 = vmatpush3.msra.mxu0 %v1858_v56 }
 0x2bb   : > { %2955 = vmatprep.subr.mxu0 %v1857_v57 }
 0x2bc   : > { %2956 = vmatpush3.msra.mxu0 %v1857_v57 }
 0x2bd   : > { %2957 = vmatprep.subr.mxu0 %v1856_v58 }
 0x2be   : > { %2958 = vmatpush3.msra.mxu0 %v1856_v58 }
 0x2bf   : > { %2959 = vmatprep.subr.mxu0 %v1855_v1 }
 0x2c0   : > { %2960 = vmatpush3.msra.mxu0 %v1855_v1 }
 0x2c1   : > { %2961 = vmatprep.subr.mxu0 %v1854_v59 }
 0x2c2   : > { %2962 = vmatpush3.msra.mxu0 %v1854_v59 }
 0x2c3   : > { %2963 = vmatprep.subr.mxu0 %v1853_v61 }
 0x2c4   : > { %2964 = vmatpush3.msra.mxu0 %v1853_v61 }
 0x2c5   : > { %2965 = vmatprep.subr.mxu0 %v1852_v6 }
 0x2c6   : > { %2966 = vmatpush3.msra.mxu0 %v1852_v6 }
 0x2c7   : > { %2967 = vmatprep.subr.mxu0 %v1851_v62 }
 0x2c8   : > { %2968 = vmatpush3.msra.mxu0 %v1851_v62 }
 0x2c9   : > { %2969 = vmatprep.subr.mxu0 %v1850_v63 }
 0x2ca   : > { %2970 = vmatpush3.msra.mxu0 %v1850_v63 }
 0x2cb   : > { %2971 = vmatprep.subr.mxu0 %v1849_v3 }
 0x2cc   : > { %2972 = vmatpush3.msra.mxu0 %v1849_v3 }
 0x2cd   : > { %2973 = vmatprep.subr.mxu0 %v1848_v4 }
 0x2ce   : > { %2974 = vmatpush3.msra.mxu0 %v1848_v4 }
 0x2cf   : > { %2975 = vmatprep.subr.mxu0 %v1847_v5 }
 0x2d0   : > { %2976 = vmatpush3.msra.mxu0 %v1847_v5 }
 0x2d1   : > { %2977 = vmatprep.subr.mxu0 %v1846_v7 }
 0x2d2   : > { %2978 = vmatpush3.msra.mxu0 %v1846_v7 }
 0x2d3   : > { %2979 = vmatprep.subr.mxu0 %v1845_v8 }
 0x2d4   : > { %2980 = vmatpush3.msra.mxu0 %v1845_v8 }
 0x2d5   : > { %2982 = vmatmul.mubr.f32.vlgmr.msra.gmra.mxu0 %v3723_v33 }
 0x34d   : > { %v2878_v11 = vpop.f32.mrf.mxu1 }
 0x34f   : > { %v1633_v14 = vpop.f32.mrf.mxu1 }
 0x355   : > { %v2843_v10 = vpop.f32.mrf.mxu0 }
 0x356   : > { %v1639_v13 = vadd.f32 %v2878_v11, %v2843_v10 }
 0x357   : > { %v1558_v9 = vpop.f32.mrf.mxu0 }
 0x358   : > { %v1634_v16 = vadd.f32 %v1633_v14, %v1558_v9 }
 0x36e   : > { %v2948_v21 = vpop.f32.mrf.mxu1 }
 0x370   : > { %v1833_v25 = vpop.f32.mrf.mxu1 }
 0x375   : > { %v2913_v12 = vpop.f32.mrf.mxu0 }
 0x376   : > { %v1742_v19 = vadd.f32 %v2913_v12, %v1639_v13 }
 0x377   : > { %v1732_v15 = vpop.f32.mrf.mxu0 }
 0x378   : > { %v1741_v22 = vadd.f32 %v1732_v15, %v1634_v16  ;;  %v1843_v24 = vadd.f32 %v2948_v21, %v1742_v19 }
 0x37a   : > { %v1842_v27 = vadd.f32 %v1833_v25, %v1741_v22 }
 0x395   : > { %v2983_v60 = vpop.f32.mrf.mxu0 }
 0x396   : > { %v1944_v26 = vadd.f32 %v2983_v60, %v1843_v24 }
 0x397   : > { %v1934_v29 = vpop.f32.mrf.mxu0 }
 0x398   : > { %v1954_v30 = vadd.f32 %v2108_v17, %v1944_v26  ;;  %v1943_v31 = vadd.f32 %v1934_v29, %v1842_v27 }
 0x39a   : > { %v1964_v33 = vmul.f32 %v2110_v28, %v1954_v30  ;;  %v1953_v34 = vadd.f32 %v2108_v17, %v1943_v31 }
 0x39c   : > { %v1974_v35 = vadd.f32 %v2112_v32, %v1964_v33  ;;  %v1963_v36 = vmul.f32 %v2110_v28, %v1953_v34 }
 0x39e   : > { %1976 = vst [vmem:[%s246_s22 + $0x8] sm:$0xff] %v1974_v35  ;;  %v1973_v39 = vadd.f32 %v2112_v32, %v1963_v36 }
 0x3a0   : > { %1975 = vst [vmem:[%s246_s22] sm:$0xff] %v1973_v39 }
 0x3a1   : > { %3124 = shalt.err (!%p3121_p5)
}
 0x3a2   : > { %s3125_s27 = scalar_lea.hbm %s3747_s12, 256  ;;  %s3129_s22 = scalar_lea.hbm %s3809_s5, 1024 }
 0x3a3   : > { %p3126_p6 = scmp.ne.s32.totalorder %s3747_s12, %s3125_s27  ;;  %p3130_p11 = scmp.lt.s32.totalorder %s3747_s12, %s3809_s5 }
 0x3a4   : > { %p3131_p13 = scmp.lt.s32.totalorder %s3129_s22, %s3125_s27 }
 0x3a5   : > { %p3127_p7 = pnand %p3126_p6, %p3299_p3 }
 0x3a6   : > { %p3132_p10 = por %p3131_p13, %p3130_p11 }
 0x3a7   : > { %p3128_p9 = pneg %p3127_p7 }
 0x3a9   : > { %p3133_p12 = pnand %p3132_p10, %p3128_p9 }
 0x3ab   : > { %3136 = shalt.err (!%p3133_p12)
}
 0x3ac   : > { %s3215_s11 = smov 128   ;;  %s3216_s6 = smov 8  }
 0x3ad   : > { %2989 = dma.vmem_to_hbm [thread:$0]  (%p3299_p3), %s3749_s26, 256, %s3747_s12, %s3753_s30, %s3215_s11, %s3215_s11, %s3216_s6  }
 0x3ae PF: > { %p3001_p0 = scmp.ge.s32.totalorder %s3207_s25, 2  ;;  %s2008_s9 = sand.u32 1, %s3179_s18  }
 0x3af   : > { %s2009_s14 = scalar_lea.sflag [#allocation4], %s2008_s9 }
 0x3b0   : > { %p2996_p1 = pnand %p3001_p0, %p3308_p8 }
 0x3b2   : > { %p2997_p2 = pneg %p2996_p1 }
 0x3b4   : > { %3174 = dma.done.wait (%p2997_p2), %s2009_s14, 256  }
 0x3b5   : > { %3176 = vsyncadd (%p2997_p2), %s2009_s14, 4294967040  ;;  %s19_s25 = sadd.s32 1, %s3207_s25   ;;  %s3815_s18 = smov %s3183_s19 }
 0x3b6   : > { %p16_p4 = scmp.ge.s32.totalorder %s19_s25, 6   ;;  %s3816_s19 = smov %s3187_s20 }
 0x3b7   : > { %s3817_s20 = smov %s3326_s13  ;;  %s3818_s21 = smov %s3199_s23 }
 0x3b8   : > { %s3819_s22 = smov %s3203_s24  ;;  %s3820_s23 = smov %s3823_s28 }
 0x3b9   : > { %s3821_s24 = smov %s3827_s29  ;;  %18 = sbr.rel (!%p16_p4) target bundleno = 6 (0x6), region = 101 }
 0x3be   :  { %2014 = vsyncpa [#allocation3], 1 }
 0x3bf   :  { %2016 = vsyncpa [#allocation3 + $0x1], 1 }
 0x3c0   :  { %2017 = vsyncpa [#allocation4], 1 }
 0x3c1   :  { %2019 = vsyncpa [#allocation4 + $0x1], 1 }

</bundles_post_ra>
